<compile_context>
chip_gen: v5e
topology: v5e:2x2
jax: 0.10.0
libtpu: 0.0.40
codegen_flags: <defaults>
</compile_context>

<pallas_src>
import jax
import jax.numpy as jnp
from jax.experimental import pallas as pl
from jax.experimental.pallas import tpu as pltpu

AUDIO_FEATURE_DIM = 68
OUT_DIM = 3
BN_EPS = 1e-5
LN_EPS = 1e-5
NEG_SLOPE = 0.2


def _round_up(n, m):
    return (n + m - 1) // m * m


# ----------------------------- Pallas kernel --------------------------------
def _layernorm(h):
    # Single pass: var = E[h^2] - E[h]^2 (one fewer full-tile subtract/multiply).
    mu = jnp.mean(h, axis=-1, keepdims=True)
    ms = jnp.mean(h * h, axis=-1, keepdims=True)
    return (h - mu) * jax.lax.rsqrt(ms - mu * mu + LN_EPS)


def _leaky_relu(h):
    return jnp.where(h >= 0, h, NEG_SLOPE * h)


def _linear(h, w_ref, b_ref):
    # bf16 operands into the MXU, f32 accumulation; bias add stays in f32.
    return (
        jnp.dot(h.astype(jnp.bfloat16), w_ref[...], preferred_element_type=jnp.float32)
        + b_ref[...]
    )


def vad_kernel(
    x_ref,
    # fc1
    w1_ref, b1_ref,
    # res1 (two linears)
    r1w1_ref, r1b1_ref, r1w2_ref, r1b2_ref,
    # res2 (two linears)
    r2w1_ref, r2b1_ref, r2w2_ref, r2b2_ref,
    # output head (three linears)
    ow1_ref, ob1_ref, ow2_ref, ob2_ref, ow3_ref, ob3_ref,
    out_ref,
):
    # f32 [tile, 68]; BatchNorm eval-mode rescale already folded into w1.
    x = x_ref[...]

    # fc1: Linear -> LayerNorm -> LeakyReLU -> (Dropout = identity)
    x1 = _leaky_relu(_layernorm(_linear(x, w1_ref, b1_ref)))

    # res1 block
    r = _leaky_relu(_layernorm(_linear(x1, r1w1_ref, r1b1_ref)))
    r = _layernorm(_linear(r, r1w2_ref, r1b2_ref))
    x2 = x1 + r

    # res2 block
    r = _leaky_relu(_layernorm(_linear(x2, r2w1_ref, r2b1_ref)))
    r = _layernorm(_linear(r, r2w2_ref, r2b2_ref))
    x3 = x2 + r

    # output head
    h = _leaky_relu(_layernorm(_linear(x3, ow1_ref, ob1_ref)))
    h = _leaky_relu(_layernorm(_linear(h, ow2_ref, ob2_ref)))
    out_ref[...] = jnp.tanh(_linear(h, ow3_ref, ob3_ref)).astype(out_ref.dtype)


# ------------------------------ wrapper --------------------------------------
def prepare_params(params):
    """Fold the eval-mode BN scale into w1 and cast weights to bf16.

    Input: list of (w [in,out] f32, b [1,out] f32) in layer order.
    """
    prepared = []
    for idx, (w, b) in enumerate(params):
        w = w.astype(jnp.float32)
        b = jnp.reshape(b, (1, -1)).astype(jnp.float32)
        if idx == 0:
            # eval-mode BatchNorm with fresh stats == x * 1/sqrt(1+eps); fold into w1.
            w = w * (1.0 / jnp.sqrt(1.0 + BN_EPS))
        prepared.append((w.astype(jnp.bfloat16), b))
    return prepared


def audio_vad_forward(x, prepared_params, *, batch_tile=512):
    """x: [B, 68] float32.  Returns [B, 3] float32 VAD predictions."""
    B, D = x.shape
    assert D == AUDIO_FEATURE_DIM

    x = x.astype(jnp.float32)

    # Batch tiling: one grid step if the (8-aligned) batch fits in one tile,
    # otherwise large multiple-of-8 tiles.  ~0.5 MB weights (bf16) + a few MB of
    # f32 activations per 512-row tile fit comfortably in default scoped VMEM
    # on v5e/v6e/v7x.
    b8 = _round_up(B, 8)
    tile = b8 if b8 <= batch_tile else _round_up(batch_tile, 8)
    padded_B = _round_up(b8, tile)
    if padded_B != B:
        x = jnp.pad(x, ((0, padded_B - B), (0, 0)))

    flat_weights = []
    in_specs = [pl.BlockSpec((tile, AUDIO_FEATURE_DIM), lambda i: (i, 0))]
    for w, b in prepared_params:
        flat_weights.append(w)
        flat_weights.append(b)
        # Full arrays, constant block index -> stay resident in VMEM across the grid.
        in_specs.append(pl.BlockSpec(w.shape, lambda i: (0, 0)))
        in_specs.append(pl.BlockSpec(b.shape, lambda i: (0, 0)))

    out_spec = pl.BlockSpec((tile, OUT_DIM), lambda i: (i, 0))

    fn = pl.pallas_call(
        vad_kernel,
        out_shape=jax.ShapeDtypeStruct((padded_B, OUT_DIM), jnp.float32),
        grid_spec=pltpu.PrefetchScalarGridSpec(
            num_scalar_prefetch=0,
            grid=(padded_B // tile,),
            in_specs=in_specs,
            out_specs=out_spec,
        ),
        compiler_params=pltpu.CompilerParams(
            dimension_semantics=("parallel",),
        ),
    )
    out = fn(x, *flat_weights)
    return out[:B]


# --------------------------- parameter init -----------------------------------
def xavier_uniform(key, fan_in, fan_out):
    bound = jnp.sqrt(6.0 / (fan_in + fan_out))
    # Stored as [in, out]; matches nn.Linear weight^T.
    return jax.random.uniform(
        key, (fan_in, fan_out), minval=-bound, maxval=bound, dtype=jnp.float32
    )


LAYER_DIMS = [
    (AUDIO_FEATURE_DIM, 256),          # fc1
    (256, 256), (256, 256),            # res1
    (256, 256), (256, 256),            # res2
    (256, 128), (128, 64), (64, 3),    # output head
]


def init_params(key):
    keys = jax.random.split(key, len(LAYER_DIMS))
    return [
        (xavier_uniform(k, fi, fo), jnp.zeros((1, fo), dtype=jnp.float32))
        for k, (fi, fo) in zip(keys, LAYER_DIMS)
    ]


# ------------------------- pure-JAX references ---------------------------------
def reference_forward_matched(x, prepared_params):
    """Same bf16-at-matmul numerics / folding as the kernel (XLA execution)."""
    def ln(h):
        mu = jnp.mean(h, axis=-1, keepdims=True)
        ms = jnp.mean(h * h, axis=-1, keepdims=True)
        return (h - mu) * jax.lax.rsqrt(ms - mu * mu + LN_EPS)

    def lrelu(h):
        return jnp.where(h >= 0, h, NEG_SLOPE * h)

    def lin(h, wb):
        w, b = wb
        return jnp.dot(h.astype(jnp.bfloat16), w, preferred_element_type=jnp.float32) + b

    p = prepared_params
    x = x.astype(jnp.float32)
    x1 = lrelu(ln(lin(x, p[0])))
    r = lrelu(ln(lin(x1, p[1]))); r = ln(lin(r, p[2])); x2 = x1 + r
    r = lrelu(ln(lin(x2, p[3]))); r = ln(lin(r, p[4])); x3 = x2 + r
    h = lrelu(ln(lin(x3, p[5])))
    h = lrelu(ln(lin(h, p[6])))
    return jnp.tanh(lin(h, p[7]))


def reference_forward_f32(x, params):
    """Original module semantics, full f32."""
    def ln(h):
        mu = jnp.mean(h, axis=-1, keepdims=True)
        var = jnp.mean((h - mu) ** 2, axis=-1, keepdims=True)
        return (h - mu) / jnp.sqrt(var + LN_EPS)

    def lrelu(h):
        return jnp.where(h >= 0, h, NEG_SLOPE * h)

    (w1, b1), (r1a_w, r1a_b), (r1b_w, r1b_b), (r2a_w, r2a_b), (r2b_w, r2b_b), \
        (o1_w, o1_b), (o2_w, o2_b), (o3_w, o3_b) = params

    x = x / jnp.sqrt(1.0 + BN_EPS)
    x1 = lrelu(ln(x @ w1 + b1))
    r = lrelu(ln(x1 @ r1a_w + r1a_b)); r = ln(r @ r1b_w + r1b_b); x2 = x1 + r
    r = lrelu(ln(x2 @ r2a_w + r2a_b)); r = ln(r @ r2b_w + r2b_b); x3 = x2 + r
    h = lrelu(ln(x3 @ o1_w + o1_b))
    h = lrelu(ln(h @ o2_w + o2_b))
    return jnp.tanh(h @ o3_w + o3_b)


# --------------------------------- main ---------------------------------------
if __name__ == "__main__":
    key = jax.random.PRNGKey(0)
    k_params, k_x = jax.random.split(key)

    params = init_params(k_params)
    prepared = prepare_params(params)

    B = 16  # small example batch; wrapper handles padding/tiling for any B
    x = jax.random.normal(k_x, (B, AUDIO_FEATURE_DIM), dtype=jnp.float32)

    out = jax.block_until_ready(audio_vad_forward(x, prepared, batch_tile=512))
    assert out.shape == (B, OUT_DIM)

    ref_matched = reference_forward_matched(x, prepared)
    ref_f32 = reference_forward_f32(x, params)

    assert jnp.allclose(out, ref_matched, atol=1e-3, rtol=1e-3), \
        "mismatch vs bf16-matched reference"
    assert jnp.allclose(out, ref_f32, atol=5e-2, rtol=5e-2), \
        "mismatch vs f32 reference"

    print("KERNEL_OK")
</pallas_src>

<mosaic_0001>
module attributes {stable_mosaic.version = 11 : i64} {
  func.func @vad_kernel(%arg0: i32, %arg1: memref<16x68xf32, #tpu.memory_space<vmem>>, %arg2: memref<68x256xbf16, #tpu.memory_space<vmem>>, %arg3: memref<1x256xf32, #tpu.memory_space<vmem>>, %arg4: memref<256x256xbf16, #tpu.memory_space<vmem>>, %arg5: memref<1x256xf32, #tpu.memory_space<vmem>>, %arg6: memref<256x256xbf16, #tpu.memory_space<vmem>>, %arg7: memref<1x256xf32, #tpu.memory_space<vmem>>, %arg8: memref<256x256xbf16, #tpu.memory_space<vmem>>, %arg9: memref<1x256xf32, #tpu.memory_space<vmem>>, %arg10: memref<256x256xbf16, #tpu.memory_space<vmem>>, %arg11: memref<1x256xf32, #tpu.memory_space<vmem>>, %arg12: memref<256x128xbf16, #tpu.memory_space<vmem>>, %arg13: memref<1x128xf32, #tpu.memory_space<vmem>>, %arg14: memref<128x64xbf16, #tpu.memory_space<vmem>>, %arg15: memref<1x64xf32, #tpu.memory_space<vmem>>, %arg16: memref<64x3xbf16, #tpu.memory_space<vmem>>, %arg17: memref<1x3xf32, #tpu.memory_space<vmem>>, %arg18: memref<16x3xf32, #tpu.memory_space<vmem>>) attributes {dimension_semantics = [#tpu.dimension_semantics<parallel>], iteration_bounds = array<i64: 1>, scalar_prefetch = 0 : i64, scratch_operands = 0 : i64, tpu.core_type = #tpu.core_type<tc>, window_params = [{transform_indices = @transform_0, window_bounds = array<i64: 16, 68>}, {pipeline_mode = #tpu.pipeline_mode<synchronous>, transform_indices = @transform_1, window_bounds = array<i64: 68, 256>}, {pipeline_mode = #tpu.pipeline_mode<synchronous>, transform_indices = @transform_2, window_bounds = array<i64: 1, 256>}, {pipeline_mode = #tpu.pipeline_mode<synchronous>, transform_indices = @transform_3, window_bounds = array<i64: 256, 256>}, {pipeline_mode = #tpu.pipeline_mode<synchronous>, transform_indices = @transform_4, window_bounds = array<i64: 1, 256>}, {pipeline_mode = #tpu.pipeline_mode<synchronous>, transform_indices = @transform_5, window_bounds = array<i64: 256, 256>}, {pipeline_mode = #tpu.pipeline_mode<synchronous>, transform_indices = @transform_6, window_bounds = array<i64: 1, 256>}, {pipeline_mode = #tpu.pipeline_mode<synchronous>, transform_indices = @transform_7, window_bounds = array<i64: 256, 256>}, {pipeline_mode = #tpu.pipeline_mode<synchronous>, transform_indices = @transform_8, window_bounds = array<i64: 1, 256>}, {pipeline_mode = #tpu.pipeline_mode<synchronous>, transform_indices = @transform_9, window_bounds = array<i64: 256, 256>}, {pipeline_mode = #tpu.pipeline_mode<synchronous>, transform_indices = @transform_10, window_bounds = array<i64: 1, 256>}, {pipeline_mode = #tpu.pipeline_mode<synchronous>, transform_indices = @transform_11, window_bounds = array<i64: 256, 128>}, {pipeline_mode = #tpu.pipeline_mode<synchronous>, transform_indices = @transform_12, window_bounds = array<i64: 1, 128>}, {pipeline_mode = #tpu.pipeline_mode<synchronous>, transform_indices = @transform_13, window_bounds = array<i64: 128, 64>}, {pipeline_mode = #tpu.pipeline_mode<synchronous>, transform_indices = @transform_14, window_bounds = array<i64: 1, 64>}, {pipeline_mode = #tpu.pipeline_mode<synchronous>, transform_indices = @transform_15, window_bounds = array<i64: 64, 3>}, {pipeline_mode = #tpu.pipeline_mode<synchronous>, transform_indices = @transform_16, window_bounds = array<i64: 1, 3>}, {transform_indices = @transform_17, window_bounds = array<i64: 16, 3>}]} {
    %c0 = arith.constant 0 : index
    %c0_0 = arith.constant 0 : index
    %0 = vector.load %arg1[%c0, %c0_0] : memref<16x68xf32, #tpu.memory_space<vmem>>, vector<16x68xf32>
    %1 = arith.truncf %0 : vector<16x68xf32> to vector<16x68xbf16>
    %c0_1 = arith.constant 0 : index
    %c0_2 = arith.constant 0 : index
    %2 = vector.load %arg2[%c0_1, %c0_2] : memref<68x256xbf16, #tpu.memory_space<vmem>>, vector<68x256xbf16>
    %cst = arith.constant dense<0.000000e+00> : vector<16x256xf32>
    %3 = tpu.matmul %1, %2, %cst {dimension_numbers = #tpu.dot_dimension_numbers<[1], [0], [0], [1], [0, 0, 1, 1], [], []>} : vector<16x68xbf16>, vector<68x256xbf16>, vector<16x256xf32> -> vector<16x256xf32>
    %c0_3 = arith.constant 0 : index
    %c0_4 = arith.constant 0 : index
    %4 = vector.load %arg3[%c0_3, %c0_4] : memref<1x256xf32, #tpu.memory_space<vmem>>, vector<1x256xf32>
    %5 = vector.broadcast %4 : vector<1x256xf32> to vector<16x256xf32>
    %6 = arith.addf %3, %5 : vector<16x256xf32>
    %cst_5 = arith.constant dense<0.000000e+00> : vector<16xf32>
    %7 = vector.multi_reduction <add>, %6, %cst_5 [1] : vector<16x256xf32> to vector<16xf32>
    %8 = vector.shape_cast %7 : vector<16xf32> to vector<16x1xf32>
    %cst_6 = arith.constant 2.560000e+02 : f32
    %9 = vector.broadcast %cst_6 : f32 to vector<16x1xf32>
    %10 = arith.divf %8, %9 : vector<16x1xf32>
    %11 = arith.mulf %6, %6 : vector<16x256xf32>
    %cst_7 = arith.constant dense<0.000000e+00> : vector<16xf32>
    %12 = vector.multi_reduction <add>, %11, %cst_7 [1] : vector<16x256xf32> to vector<16xf32>
    %13 = vector.shape_cast %12 : vector<16xf32> to vector<16x1xf32>
    %cst_8 = arith.constant 2.560000e+02 : f32
    %14 = vector.broadcast %cst_8 : f32 to vector<16x1xf32>
    %15 = arith.divf %13, %14 : vector<16x1xf32>
    %16 = vector.broadcast %10 : vector<16x1xf32> to vector<16x256xf32>
    %17 = arith.subf %6, %16 : vector<16x256xf32>
    %18 = arith.mulf %10, %10 : vector<16x1xf32>
    %19 = arith.subf %15, %18 : vector<16x1xf32>
    %cst_9 = arith.constant 9.99999974E-6 : f32
    %20 = vector.broadcast %cst_9 : f32 to vector<16x1xf32>
    %21 = arith.addf %19, %20 : vector<16x1xf32>
    %22 = math.rsqrt %21 : vector<16x1xf32>
    %23 = vector.broadcast %22 : vector<16x1xf32> to vector<16x256xf32>
    %24 = arith.mulf %17, %23 : vector<16x256xf32>
    %cst_10 = arith.constant 0.000000e+00 : f32
    %25 = vector.broadcast %cst_10 : f32 to vector<16x256xf32>
    %26 = arith.cmpf oge, %24, %25 : vector<16x256xf32>
    %cst_11 = arith.constant 2.000000e-01 : f32
    %27 = vector.broadcast %cst_11 : f32 to vector<16x256xf32>
    %28 = arith.mulf %27, %24 : vector<16x256xf32>
    %29 = arith.select %26, %24, %28 : vector<16x256xi1>, vector<16x256xf32>
    %30 = arith.truncf %29 : vector<16x256xf32> to vector<16x256xbf16>
    %c0_12 = arith.constant 0 : index
    %c0_13 = arith.constant 0 : index
    %31 = vector.load %arg4[%c0_12, %c0_13] : memref<256x256xbf16, #tpu.memory_space<vmem>>, vector<256x256xbf16>
    %cst_14 = arith.constant dense<0.000000e+00> : vector<16x256xf32>
    %32 = tpu.matmul %30, %31, %cst_14 {dimension_numbers = #tpu.dot_dimension_numbers<[1], [0], [0], [1], [0, 0, 1, 1], [], []>} : vector<16x256xbf16>, vector<256x256xbf16>, vector<16x256xf32> -> vector<16x256xf32>
    %c0_15 = arith.constant 0 : index
    %c0_16 = arith.constant 0 : index
    %33 = vector.load %arg5[%c0_15, %c0_16] : memref<1x256xf32, #tpu.memory_space<vmem>>, vector<1x256xf32>
    %34 = vector.broadcast %33 : vector<1x256xf32> to vector<16x256xf32>
    %35 = arith.addf %32, %34 : vector<16x256xf32>
    %cst_17 = arith.constant dense<0.000000e+00> : vector<16xf32>
    %36 = vector.multi_reduction <add>, %35, %cst_17 [1] : vector<16x256xf32> to vector<16xf32>
    %37 = vector.shape_cast %36 : vector<16xf32> to vector<16x1xf32>
    %cst_18 = arith.constant 2.560000e+02 : f32
    %38 = vector.broadcast %cst_18 : f32 to vector<16x1xf32>
    %39 = arith.divf %37, %38 : vector<16x1xf32>
    %40 = arith.mulf %35, %35 : vector<16x256xf32>
    %cst_19 = arith.constant dense<0.000000e+00> : vector<16xf32>
    %41 = vector.multi_reduction <add>, %40, %cst_19 [1] : vector<16x256xf32> to vector<16xf32>
    %42 = vector.shape_cast %41 : vector<16xf32> to vector<16x1xf32>
    %cst_20 = arith.constant 2.560000e+02 : f32
    %43 = vector.broadcast %cst_20 : f32 to vector<16x1xf32>
    %44 = arith.divf %42, %43 : vector<16x1xf32>
    %45 = vector.broadcast %39 : vector<16x1xf32> to vector<16x256xf32>
    %46 = arith.subf %35, %45 : vector<16x256xf32>
    %47 = arith.mulf %39, %39 : vector<16x1xf32>
    %48 = arith.subf %44, %47 : vector<16x1xf32>
    %cst_21 = arith.constant 9.99999974E-6 : f32
    %49 = vector.broadcast %cst_21 : f32 to vector<16x1xf32>
    %50 = arith.addf %48, %49 : vector<16x1xf32>
    %51 = math.rsqrt %50 : vector<16x1xf32>
    %52 = vector.broadcast %51 : vector<16x1xf32> to vector<16x256xf32>
    %53 = arith.mulf %46, %52 : vector<16x256xf32>
    %cst_22 = arith.constant 0.000000e+00 : f32
    %54 = vector.broadcast %cst_22 : f32 to vector<16x256xf32>
    %55 = arith.cmpf oge, %53, %54 : vector<16x256xf32>
    %cst_23 = arith.constant 2.000000e-01 : f32
    %56 = vector.broadcast %cst_23 : f32 to vector<16x256xf32>
    %57 = arith.mulf %56, %53 : vector<16x256xf32>
    %58 = arith.select %55, %53, %57 : vector<16x256xi1>, vector<16x256xf32>
    %59 = arith.truncf %58 : vector<16x256xf32> to vector<16x256xbf16>
    %c0_24 = arith.constant 0 : index
    %c0_25 = arith.constant 0 : index
    %60 = vector.load %arg6[%c0_24, %c0_25] : memref<256x256xbf16, #tpu.memory_space<vmem>>, vector<256x256xbf16>
    %cst_26 = arith.constant dense<0.000000e+00> : vector<16x256xf32>
    %61 = tpu.matmul %59, %60, %cst_26 {dimension_numbers = #tpu.dot_dimension_numbers<[1], [0], [0], [1], [0, 0, 1, 1], [], []>} : vector<16x256xbf16>, vector<256x256xbf16>, vector<16x256xf32> -> vector<16x256xf32>
    %c0_27 = arith.constant 0 : index
    %c0_28 = arith.constant 0 : index
    %62 = vector.load %arg7[%c0_27, %c0_28] : memref<1x256xf32, #tpu.memory_space<vmem>>, vector<1x256xf32>
    %63 = vector.broadcast %62 : vector<1x256xf32> to vector<16x256xf32>
    %64 = arith.addf %61, %63 : vector<16x256xf32>
    %cst_29 = arith.constant dense<0.000000e+00> : vector<16xf32>
    %65 = vector.multi_reduction <add>, %64, %cst_29 [1] : vector<16x256xf32> to vector<16xf32>
    %66 = vector.shape_cast %65 : vector<16xf32> to vector<16x1xf32>
    %cst_30 = arith.constant 2.560000e+02 : f32
    %67 = vector.broadcast %cst_30 : f32 to vector<16x1xf32>
    %68 = arith.divf %66, %67 : vector<16x1xf32>
    %69 = arith.mulf %64, %64 : vector<16x256xf32>
    %cst_31 = arith.constant dense<0.000000e+00> : vector<16xf32>
    %70 = vector.multi_reduction <add>, %69, %cst_31 [1] : vector<16x256xf32> to vector<16xf32>
    %71 = vector.shape_cast %70 : vector<16xf32> to vector<16x1xf32>
    %cst_32 = arith.constant 2.560000e+02 : f32
    %72 = vector.broadcast %cst_32 : f32 to vector<16x1xf32>
    %73 = arith.divf %71, %72 : vector<16x1xf32>
    %74 = vector.broadcast %68 : vector<16x1xf32> to vector<16x256xf32>
    %75 = arith.subf %64, %74 : vector<16x256xf32>
    %76 = arith.mulf %68, %68 : vector<16x1xf32>
    %77 = arith.subf %73, %76 : vector<16x1xf32>
    %cst_33 = arith.constant 9.99999974E-6 : f32
    %78 = vector.broadcast %cst_33 : f32 to vector<16x1xf32>
    %79 = arith.addf %77, %78 : vector<16x1xf32>
    %80 = math.rsqrt %79 : vector<16x1xf32>
    %81 = vector.broadcast %80 : vector<16x1xf32> to vector<16x256xf32>
    %82 = arith.mulf %75, %81 : vector<16x256xf32>
    %83 = arith.addf %29, %82 : vector<16x256xf32>
    %84 = arith.truncf %83 : vector<16x256xf32> to vector<16x256xbf16>
    %c0_34 = arith.constant 0 : index
    %c0_35 = arith.constant 0 : index
    %85 = vector.load %arg8[%c0_34, %c0_35] : memref<256x256xbf16, #tpu.memory_space<vmem>>, vector<256x256xbf16>
    %cst_36 = arith.constant dense<0.000000e+00> : vector<16x256xf32>
    %86 = tpu.matmul %84, %85, %cst_36 {dimension_numbers = #tpu.dot_dimension_numbers<[1], [0], [0], [1], [0, 0, 1, 1], [], []>} : vector<16x256xbf16>, vector<256x256xbf16>, vector<16x256xf32> -> vector<16x256xf32>
    %c0_37 = arith.constant 0 : index
    %c0_38 = arith.constant 0 : index
    %87 = vector.load %arg9[%c0_37, %c0_38] : memref<1x256xf32, #tpu.memory_space<vmem>>, vector<1x256xf32>
    %88 = vector.broadcast %87 : vector<1x256xf32> to vector<16x256xf32>
    %89 = arith.addf %86, %88 : vector<16x256xf32>
    %cst_39 = arith.constant dense<0.000000e+00> : vector<16xf32>
    %90 = vector.multi_reduction <add>, %89, %cst_39 [1] : vector<16x256xf32> to vector<16xf32>
    %91 = vector.shape_cast %90 : vector<16xf32> to vector<16x1xf32>
    %cst_40 = arith.constant 2.560000e+02 : f32
    %92 = vector.broadcast %cst_40 : f32 to vector<16x1xf32>
    %93 = arith.divf %91, %92 : vector<16x1xf32>
    %94 = arith.mulf %89, %89 : vector<16x256xf32>
    %cst_41 = arith.constant dense<0.000000e+00> : vector<16xf32>
    %95 = vector.multi_reduction <add>, %94, %cst_41 [1] : vector<16x256xf32> to vector<16xf32>
    %96 = vector.shape_cast %95 : vector<16xf32> to vector<16x1xf32>
    %cst_42 = arith.constant 2.560000e+02 : f32
    %97 = vector.broadcast %cst_42 : f32 to vector<16x1xf32>
    %98 = arith.divf %96, %97 : vector<16x1xf32>
    %99 = vector.broadcast %93 : vector<16x1xf32> to vector<16x256xf32>
    %100 = arith.subf %89, %99 : vector<16x256xf32>
    %101 = arith.mulf %93, %93 : vector<16x1xf32>
    %102 = arith.subf %98, %101 : vector<16x1xf32>
    %cst_43 = arith.constant 9.99999974E-6 : f32
    %103 = vector.broadcast %cst_43 : f32 to vector<16x1xf32>
    %104 = arith.addf %102, %103 : vector<16x1xf32>
    %105 = math.rsqrt %104 : vector<16x1xf32>
    %106 = vector.broadcast %105 : vector<16x1xf32> to vector<16x256xf32>
    %107 = arith.mulf %100, %106 : vector<16x256xf32>
    %cst_44 = arith.constant 0.000000e+00 : f32
    %108 = vector.broadcast %cst_44 : f32 to vector<16x256xf32>
    %109 = arith.cmpf oge, %107, %108 : vector<16x256xf32>
    %cst_45 = arith.constant 2.000000e-01 : f32
    %110 = vector.broadcast %cst_45 : f32 to vector<16x256xf32>
    %111 = arith.mulf %110, %107 : vector<16x256xf32>
    %112 = arith.select %109, %107, %111 : vector<16x256xi1>, vector<16x256xf32>
    %113 = arith.truncf %112 : vector<16x256xf32> to vector<16x256xbf16>
    %c0_46 = arith.constant 0 : index
    %c0_47 = arith.constant 0 : index
    %114 = vector.load %arg10[%c0_46, %c0_47] : memref<256x256xbf16, #tpu.memory_space<vmem>>, vector<256x256xbf16>
    %cst_48 = arith.constant dense<0.000000e+00> : vector<16x256xf32>
    %115 = tpu.matmul %113, %114, %cst_48 {dimension_numbers = #tpu.dot_dimension_numbers<[1], [0], [0], [1], [0, 0, 1, 1], [], []>} : vector<16x256xbf16>, vector<256x256xbf16>, vector<16x256xf32> -> vector<16x256xf32>
    %c0_49 = arith.constant 0 : index
    %c0_50 = arith.constant 0 : index
    %116 = vector.load %arg11[%c0_49, %c0_50] : memref<1x256xf32, #tpu.memory_space<vmem>>, vector<1x256xf32>
    %117 = vector.broadcast %116 : vector<1x256xf32> to vector<16x256xf32>
    %118 = arith.addf %115, %117 : vector<16x256xf32>
    %cst_51 = arith.constant dense<0.000000e+00> : vector<16xf32>
    %119 = vector.multi_reduction <add>, %118, %cst_51 [1] : vector<16x256xf32> to vector<16xf32>
    %120 = vector.shape_cast %119 : vector<16xf32> to vector<16x1xf32>
    %cst_52 = arith.constant 2.560000e+02 : f32
    %121 = vector.broadcast %cst_52 : f32 to vector<16x1xf32>
    %122 = arith.divf %120, %121 : vector<16x1xf32>
    %123 = arith.mulf %118, %118 : vector<16x256xf32>
    %cst_53 = arith.constant dense<0.000000e+00> : vector<16xf32>
    %124 = vector.multi_reduction <add>, %123, %cst_53 [1] : vector<16x256xf32> to vector<16xf32>
    %125 = vector.shape_cast %124 : vector<16xf32> to vector<16x1xf32>
    %cst_54 = arith.constant 2.560000e+02 : f32
    %126 = vector.broadcast %cst_54 : f32 to vector<16x1xf32>
    %127 = arith.divf %125, %126 : vector<16x1xf32>
    %128 = vector.broadcast %122 : vector<16x1xf32> to vector<16x256xf32>
    %129 = arith.subf %118, %128 : vector<16x256xf32>
    %130 = arith.mulf %122, %122 : vector<16x1xf32>
    %131 = arith.subf %127, %130 : vector<16x1xf32>
    %cst_55 = arith.constant 9.99999974E-6 : f32
    %132 = vector.broadcast %cst_55 : f32 to vector<16x1xf32>
    %133 = arith.addf %131, %132 : vector<16x1xf32>
    %134 = math.rsqrt %133 : vector<16x1xf32>
    %135 = vector.broadcast %134 : vector<16x1xf32> to vector<16x256xf32>
    %136 = arith.mulf %129, %135 : vector<16x256xf32>
    %137 = arith.addf %83, %136 : vector<16x256xf32>
    %138 = arith.truncf %137 : vector<16x256xf32> to vector<16x256xbf16>
    %c0_56 = arith.constant 0 : index
    %c0_57 = arith.constant 0 : index
    %139 = vector.load %arg12[%c0_56, %c0_57] : memref<256x128xbf16, #tpu.memory_space<vmem>>, vector<256x128xbf16>
    %cst_58 = arith.constant dense<0.000000e+00> : vector<16x128xf32>
    %140 = tpu.matmul %138, %139, %cst_58 {dimension_numbers = #tpu.dot_dimension_numbers<[1], [0], [0], [1], [0, 0, 1, 1], [], []>} : vector<16x256xbf16>, vector<256x128xbf16>, vector<16x128xf32> -> vector<16x128xf32>
    %c0_59 = arith.constant 0 : index
    %c0_60 = arith.constant 0 : index
    %141 = vector.load %arg13[%c0_59, %c0_60] : memref<1x128xf32, #tpu.memory_space<vmem>>, vector<1x128xf32>
    %142 = vector.broadcast %141 : vector<1x128xf32> to vector<16x128xf32>
    %143 = arith.addf %140, %142 : vector<16x128xf32>
    %cst_61 = arith.constant dense<0.000000e+00> : vector<16xf32>
    %144 = vector.multi_reduction <add>, %143, %cst_61 [1] : vector<16x128xf32> to vector<16xf32>
    %145 = vector.shape_cast %144 : vector<16xf32> to vector<16x1xf32>
    %cst_62 = arith.constant 1.280000e+02 : f32
    %146 = vector.broadcast %cst_62 : f32 to vector<16x1xf32>
    %147 = arith.divf %145, %146 : vector<16x1xf32>
    %148 = arith.mulf %143, %143 : vector<16x128xf32>
    %cst_63 = arith.constant dense<0.000000e+00> : vector<16xf32>
    %149 = vector.multi_reduction <add>, %148, %cst_63 [1] : vector<16x128xf32> to vector<16xf32>
    %150 = vector.shape_cast %149 : vector<16xf32> to vector<16x1xf32>
    %cst_64 = arith.constant 1.280000e+02 : f32
    %151 = vector.broadcast %cst_64 : f32 to vector<16x1xf32>
    %152 = arith.divf %150, %151 : vector<16x1xf32>
    %153 = vector.broadcast %147 : vector<16x1xf32> to vector<16x128xf32>
    %154 = arith.subf %143, %153 : vector<16x128xf32>
    %155 = arith.mulf %147, %147 : vector<16x1xf32>
    %156 = arith.subf %152, %155 : vector<16x1xf32>
    %cst_65 = arith.constant 9.99999974E-6 : f32
    %157 = vector.broadcast %cst_65 : f32 to vector<16x1xf32>
    %158 = arith.addf %156, %157 : vector<16x1xf32>
    %159 = math.rsqrt %158 : vector<16x1xf32>
    %160 = vector.broadcast %159 : vector<16x1xf32> to vector<16x128xf32>
    %161 = arith.mulf %154, %160 : vector<16x128xf32>
    %cst_66 = arith.constant 0.000000e+00 : f32
    %162 = vector.broadcast %cst_66 : f32 to vector<16x128xf32>
    %163 = arith.cmpf oge, %161, %162 : vector<16x128xf32>
    %cst_67 = arith.constant 2.000000e-01 : f32
    %164 = vector.broadcast %cst_67 : f32 to vector<16x128xf32>
    %165 = arith.mulf %164, %161 : vector<16x128xf32>
    %166 = arith.select %163, %161, %165 : vector<16x128xi1>, vector<16x128xf32>
    %167 = arith.truncf %166 : vector<16x128xf32> to vector<16x128xbf16>
    %c0_68 = arith.constant 0 : index
    %c0_69 = arith.constant 0 : index
    %168 = vector.load %arg14[%c0_68, %c0_69] : memref<128x64xbf16, #tpu.memory_space<vmem>>, vector<128x64xbf16>
    %cst_70 = arith.constant dense<0.000000e+00> : vector<16x64xf32>
    %169 = tpu.matmul %167, %168, %cst_70 {dimension_numbers = #tpu.dot_dimension_numbers<[1], [0], [0], [1], [0, 0, 1, 1], [], []>} : vector<16x128xbf16>, vector<128x64xbf16>, vector<16x64xf32> -> vector<16x64xf32>
    %c0_71 = arith.constant 0 : index
    %c0_72 = arith.constant 0 : index
    %170 = vector.load %arg15[%c0_71, %c0_72] : memref<1x64xf32, #tpu.memory_space<vmem>>, vector<1x64xf32>
    %171 = vector.broadcast %170 : vector<1x64xf32> to vector<16x64xf32>
    %172 = arith.addf %169, %171 : vector<16x64xf32>
    %cst_73 = arith.constant dense<0.000000e+00> : vector<16xf32>
    %173 = vector.multi_reduction <add>, %172, %cst_73 [1] : vector<16x64xf32> to vector<16xf32>
    %174 = vector.shape_cast %173 : vector<16xf32> to vector<16x1xf32>
    %cst_74 = arith.constant 6.400000e+01 : f32
    %175 = vector.broadcast %cst_74 : f32 to vector<16x1xf32>
    %176 = arith.divf %174, %175 : vector<16x1xf32>
    %177 = arith.mulf %172, %172 : vector<16x64xf32>
    %cst_75 = arith.constant dense<0.000000e+00> : vector<16xf32>
    %178 = vector.multi_reduction <add>, %177, %cst_75 [1] : vector<16x64xf32> to vector<16xf32>
    %179 = vector.shape_cast %178 : vector<16xf32> to vector<16x1xf32>
    %cst_76 = arith.constant 6.400000e+01 : f32
    %180 = vector.broadcast %cst_76 : f32 to vector<16x1xf32>
    %181 = arith.divf %179, %180 : vector<16x1xf32>
    %182 = vector.broadcast %176 : vector<16x1xf32> to vector<16x64xf32>
    %183 = arith.subf %172, %182 : vector<16x64xf32>
    %184 = arith.mulf %176, %176 : vector<16x1xf32>
    %185 = arith.subf %181, %184 : vector<16x1xf32>
    %cst_77 = arith.constant 9.99999974E-6 : f32
    %186 = vector.broadcast %cst_77 : f32 to vector<16x1xf32>
    %187 = arith.addf %185, %186 : vector<16x1xf32>
    %188 = math.rsqrt %187 : vector<16x1xf32>
    %189 = vector.broadcast %188 : vector<16x1xf32> to vector<16x64xf32>
    %190 = arith.mulf %183, %189 : vector<16x64xf32>
    %cst_78 = arith.constant 0.000000e+00 : f32
    %191 = vector.broadcast %cst_78 : f32 to vector<16x64xf32>
    %192 = arith.cmpf oge, %190, %191 : vector<16x64xf32>
    %cst_79 = arith.constant 2.000000e-01 : f32
    %193 = vector.broadcast %cst_79 : f32 to vector<16x64xf32>
    %194 = arith.mulf %193, %190 : vector<16x64xf32>
    %195 = arith.select %192, %190, %194 : vector<16x64xi1>, vector<16x64xf32>
    %196 = arith.truncf %195 : vector<16x64xf32> to vector<16x64xbf16>
    %c0_80 = arith.constant 0 : index
    %c0_81 = arith.constant 0 : index
    %197 = vector.load %arg16[%c0_80, %c0_81] : memref<64x3xbf16, #tpu.memory_space<vmem>>, vector<64x3xbf16>
    %cst_82 = arith.constant dense<0.000000e+00> : vector<16x3xf32>
    %198 = tpu.matmul %196, %197, %cst_82 {dimension_numbers = #tpu.dot_dimension_numbers<[1], [0], [0], [1], [0, 0, 1, 1], [], []>} : vector<16x64xbf16>, vector<64x3xbf16>, vector<16x3xf32> -> vector<16x3xf32>
    %c0_83 = arith.constant 0 : index
    %c0_84 = arith.constant 0 : index
    %199 = vector.load %arg17[%c0_83, %c0_84] : memref<1x3xf32, #tpu.memory_space<vmem>>, vector<1x3xf32>
    %200 = vector.broadcast %199 : vector<1x3xf32> to vector<16x3xf32>
    %201 = arith.addf %198, %200 : vector<16x3xf32>
    %202 = math.tanh %201 : vector<16x3xf32>
    %c0_85 = arith.constant 0 : index
    %c0_86 = arith.constant 0 : index
    %203 = vector.load %arg18[%c0_85, %c0_86] : memref<16x3xf32, #tpu.memory_space<vmem>>, vector<16x3xf32>
    tpu.vector_store %arg18[%c0_85, %c0_86], %202 {strides = array<i32>} : memref<16x3xf32, #tpu.memory_space<vmem>>, vector<16x3xf32>,
    return
  }
  func.func @transform_0(%arg0: i32) -> (i32, i32) {
    %c0_i32 = arith.constant 0 : i32
    %c0_i32_0 = arith.constant 0 : i32
    return %arg0, %c0_i32 : i32, i32
  }
  func.func @transform_1(%arg0: i32) -> (i32, i32) {
    %c0_i32 = arith.constant 0 : i32
    %c0_i32_0 = arith.constant 0 : i32
    %c0_i32_1 = arith.constant 0 : i32
    return %c0_i32, %c0_i32_0 : i32, i32
  }
  func.func @transform_2(%arg0: i32) -> (i32, i32) {
    %c0_i32 = arith.constant 0 : i32
    %c0_i32_0 = arith.constant 0 : i32
    %c0_i32_1 = arith.constant 0 : i32
    return %c0_i32, %c0_i32_0 : i32, i32
  }
  func.func @transform_3(%arg0: i32) -> (i32, i32) {
    %c0_i32 = arith.constant 0 : i32
    %c0_i32_0 = arith.constant 0 : i32
    %c0_i32_1 = arith.constant 0 : i32
    return %c0_i32, %c0_i32_0 : i32, i32
  }
  func.func @transform_4(%arg0: i32) -> (i32, i32) {
    %c0_i32 = arith.constant 0 : i32
    %c0_i32_0 = arith.constant 0 : i32
    %c0_i32_1 = arith.constant 0 : i32
    return %c0_i32, %c0_i32_0 : i32, i32
  }
  func.func @transform_5(%arg0: i32) -> (i32, i32) {
    %c0_i32 = arith.constant 0 : i32
    %c0_i32_0 = arith.constant 0 : i32
    %c0_i32_1 = arith.constant 0 : i32
    return %c0_i32, %c0_i32_0 : i32, i32
  }
  func.func @transform_6(%arg0: i32) -> (i32, i32) {
    %c0_i32 = arith.constant 0 : i32
    %c0_i32_0 = arith.constant 0 : i32
    %c0_i32_1 = arith.constant 0 : i32
    return %c0_i32, %c0_i32_0 : i32, i32
  }
  func.func @transform_7(%arg0: i32) -> (i32, i32) {
    %c0_i32 = arith.constant 0 : i32
    %c0_i32_0 = arith.constant 0 : i32
    %c0_i32_1 = arith.constant 0 : i32
    return %c0_i32, %c0_i32_0 : i32, i32
  }
  func.func @transform_8(%arg0: i32) -> (i32, i32) {
    %c0_i32 = arith.constant 0 : i32
    %c0_i32_0 = arith.constant 0 : i32
    %c0_i32_1 = arith.constant 0 : i32
    return %c0_i32, %c0_i32_0 : i32, i32
  }
  func.func @transform_9(%arg0: i32) -> (i32, i32) {
    %c0_i32 = arith.constant 0 : i32
    %c0_i32_0 = arith.constant 0 : i32
    %c0_i32_1 = arith.constant 0 : i32
    return %c0_i32, %c0_i32_0 : i32, i32
  }
  func.func @transform_10(%arg0: i32) -> (i32, i32) {
    %c0_i32 = arith.constant 0 : i32
    %c0_i32_0 = arith.constant 0 : i32
    %c0_i32_1 = arith.constant 0 : i32
    return %c0_i32, %c0_i32_0 : i32, i32
  }
  func.func @transform_11(%arg0: i32) -> (i32, i32) {
    %c0_i32 = arith.constant 0 : i32
    %c0_i32_0 = arith.constant 0 : i32
    %c0_i32_1 = arith.constant 0 : i32
    return %c0_i32, %c0_i32_0 : i32, i32
  }
  func.func @transform_12(%arg0: i32) -> (i32, i32) {
    %c0_i32 = arith.constant 0 : i32
    %c0_i32_0 = arith.constant 0 : i32
    %c0_i32_1 = arith.constant 0 : i32
    return %c0_i32, %c0_i32_0 : i32, i32
  }
  func.func @transform_13(%arg0: i32) -> (i32, i32) {
    %c0_i32 = arith.constant 0 : i32
    %c0_i32_0 = arith.constant 0 : i32
    %c0_i32_1 = arith.constant 0 : i32
    return %c0_i32, %c0_i32_0 : i32, i32
  }
  func.func @transform_14(%arg0: i32) -> (i32, i32) {
    %c0_i32 = arith.constant 0 : i32
    %c0_i32_0 = arith.constant 0 : i32
    %c0_i32_1 = arith.constant 0 : i32
    return %c0_i32, %c0_i32_0 : i32, i32
  }
  func.func @transform_15(%arg0: i32) -> (i32, i32) {
    %c0_i32 = arith.constant 0 : i32
    %c0_i32_0 = arith.constant 0 : i32
    %c0_i32_1 = arith.constant 0 : i32
    return %c0_i32, %c0_i32_0 : i32, i32
  }
  func.func @transform_16(%arg0: i32) -> (i32, i32) {
    %c0_i32 = arith.constant 0 : i32
    %c0_i32_0 = arith.constant 0 : i32
    %c0_i32_1 = arith.constant 0 : i32
    return %c0_i32, %c0_i32_0 : i32, i32
  }
  func.func @transform_17(%arg0: i32) -> (i32, i32) {
    %c0_i32 = arith.constant 0 : i32
    %c0_i32_0 = arith.constant 0 : i32
    return %arg0, %c0_i32 : i32, i32
  }
}

</mosaic_0001>

<bundles_post_ra>
// kernel: tpu_custom_call.1
= control target key start
LH: loop header
LB: loop body
LE: loop exit
PB: predicated region body
PF: predicated region fallthrough
CT: control target
= control target key end

     0   :  { %s3482_s0 = inlined_call_operand.vmem [shape: f32[16,68], index: 0, kind: input, shape index: {}]   ;;  %s3483_s1 = inlined_call_operand.vmem [shape: bf16[68,256], index: 1, kind: input, shape index: {}]   ;;  %s3484_s2 = inlined_call_operand.vmem [shape: f32[1,256], index: 2, kind: input, shape index: {}]   ;;  %s3485_s3 = inlined_call_operand.hbm [shape: bf16[256,256], index: 3, kind: input, shape index: {}]   ;;  %s3486_s4 = inlined_call_operand.vmem [shape: f32[1,256], index: 4, kind: input, shape index: {}]   ;;  %s3487_s5 = inlined_call_operand.hbm [shape: bf16[256,256], index: 5, kind: input, shape index: {}]   ;;  %s3488_s6 = inlined_call_operand.vmem [shape: f32[1,256], index: 6, kind: input, shape index: {}]   ;;  %s3489_s7 = inlined_call_operand.hbm [shape: bf16[256,256], index: 7, kind: input, shape index: {}]   ;;  %s3490_s8 = inlined_call_operand.vmem [shape: f32[1,256], index: 8, kind: input, shape index: {}]   ;;  %s3491_s9 = inlined_call_operand.hbm [shape: bf16[256,256], index: 9, kind: input, shape index: {}]   ;;  %s3492_s10 = inlined_call_operand.vmem [shape: f32[1,256], index: 10, kind: input, shape index: {}]   ;;  %s3493_s11 = inlined_call_operand.hbm [shape: bf16[256,128], index: 11, kind: input, shape index: {}]   ;;  %s3494_s12 = inlined_call_operand.vmem [shape: f32[1,128], index: 12, kind: input, shape index: {}]   ;;  %s3495_s13 = inlined_call_operand.vmem [shape: bf16[128,64], index: 13, kind: input, shape index: {}]   ;;  %s3496_s14 = inlined_call_operand.vmem [shape: f32[1,64], index: 14, kind: input, shape index: {}]   ;;  %s3497_s15 = inlined_call_operand.vmem [shape: bf16[64,3], index: 15, kind: input, shape index: {}]   ;;  %s3498_s16 = inlined_call_operand.vmem [shape: f32[1,3], index: 16, kind: input, shape index: {}]   ;;  %s3499_s17 = inlined_call_operand.vmem [shape: f32[16,3], index: 17, kind: output, shape index: {}]  }
   0x1   :  { %3502 = sst [smem:[#allocation13_spill]] %s3482_s0 }
   0x2   :  { %3503 = sst [smem:[#allocation14_spill]] %s3483_s1 }
   0x3   :  { %22 = vsyncpa [#allocation3], 0 }
   0x4   :  { %23 = vsyncpa [#allocation5], 0 }
   0x5   :  { %24 = vsyncpa [#allocation8], 0  ;;  %s50_s26 = sshll.u32 %s3487_s5, 4  ;;  %s3014_s27 = smov [#allocation4]   ;;  %s51_s26 = int_to_ptr.hbm [resolvable:$true] %s50_s26 }
   0x6   :  { %s52_s28 = sshll.u32 %s3014_s27, 4  ;;  %s80_s30 = sshll.u32 %s3491_s9, 4  ;;  %s53_s28 = int_to_ptr.vmem [resolvable:$true] %s52_s28  ;;  %s81_s30 = int_to_ptr.hbm [resolvable:$true] %s80_s30 }
   0x7   :  { %s3015_s18 = smov 128   ;;  %s3016_s19 = smov 8  }
   0x8   :  { %58 = dma.hbm_to_vmem [thread:$0]  %s51_s26, 4096, %s53_s28, [#allocation5], %s3015_s18, %s3015_s18, %s3016_s19  }
   0x9   :  { %s3017_s1 = smov [#allocation7]   ;;  %s35_s23 = sshll.u32 %s3485_s3, 4  ;;  %s36_s23 = int_to_ptr.hbm [resolvable:$true] %s35_s23 }
   0xa   :  { %s82_s20 = sshll.u32 %s3017_s1, 4  ;;  %s65_s25 = sshll.u32 %s3489_s7, 4  ;;  %s83_s20 = int_to_ptr.vmem [resolvable:$true] %s82_s20  ;;  %s66_s25 = int_to_ptr.hbm [resolvable:$true] %s65_s25 }
   0xb   :  { %88 = dma.hbm_to_vmem [thread:$0]  %s81_s30, 4096, %s83_s20, [#allocation8], %s3015_s18, %s3015_s18, %s3016_s19  }
   0xc   :  { %s3018_s27 = smov [#allocation2]   ;;  %s3019_s9 = smov [#allocation6]  }
   0xd   :  { %s37_s29 = sshll.u32 %s3018_s27, 4  ;;  %s67_s26 = sshll.u32 %s3019_s9, 4  ;;  %s38_s29 = int_to_ptr.vmem [resolvable:$true] %s37_s29  ;;  %s68_s26 = int_to_ptr.vmem [resolvable:$true] %s67_s26 }
   0xe   :  { %43 = dma.hbm_to_vmem [thread:$0]  %s36_s23, 4096, %s38_s29, [#allocation3], %s3015_s18, %s3015_s18, %s3016_s19  }
   0xf   :  { %s95_s1 = sshll.u32 %s3493_s11, 4  ;;  %s3020_s3 = smov [#allocation9]   ;;  %s96_s1 = int_to_ptr.hbm [resolvable:$true] %s95_s1 }
  0x10   :  { %73 = dma.hbm_to_vmem [thread:$0]  %s66_s25, 4096, %s68_s26, [#allocation5], %s3015_s18, %s3015_s18, %s3016_s19  }
  0x11   :  { %s97_s30 = sshll.u32 %s3020_s3, 4  ;;  %s3021_s20 = smov 64   ;;  %s98_s30 = int_to_ptr.vmem [resolvable:$true] %s97_s30 }
  0x12   :  { %s3022_s21 = smov 4  }
  0x13   :  { %103 = dma.hbm_to_vmem [thread:$0]  %s96_s1, 2048, %s98_s30, [#allocation8], %s3021_s20, %s3021_s20, %s3022_s21  }
  0x14   :  { %3008 = dma.done.wait [#allocation3], 4096  }
  0x15   :  { %3009 = vsyncadd [#allocation3], 4294963200 }
  0x16   :  { %3010 = dma.done.wait [#allocation5], 8192  }
  0x17   :  { %3011 = vsyncadd [#allocation5], 4294959104 }
  0x18   :  { %3012 = dma.done.wait [#allocation8], 6144  }
  0x19   :  { %3013 = vsyncadd [#allocation8], 4294961152  ;;  %s3504_s23 = sld [smem:[#allocation14_spill]]  ;;  %vm202_vm0 = vcmask 1041408   ;;  %vm198_vm1 = vcmask 556032   ;;  %v3023_v53 = vmov 256.0  }
  0x1a   :  { %s3505_s20 = sld [smem:[#allocation13_spill]]  ;;  %v147_v34 = vld [vmem:[%s3484_s2] sm:$0x3]  ;;  %2850 = vrcp.f32 %v3023_v53  ;;  %v2104_v54 = vld [vmem:[#allocation2 + $0x70] sm:$0xf] }
  0x1b   :  { %v149_v35 = vperm.slane %v147_v34, 0  ;;  %v150_v36 = vperm.slane %v147_v34, 1  ;;  %v2694_v55 = vld [vmem:[#allocation2 + $0x74] sm:$0xf0]  ;;  %v2168_v56 = vld [vmem:[#allocation2 + $0xf0] sm:$0xf] }
  0x1c   :  { %v2105_v57 = vor.u32 %v2694_v55, %v2104_v54  ;;  %v2710_v58 = vld [vmem:[#allocation2 + $0xf4] sm:$0xf0]  ;;  %v2693_v59 = vld [vmem:[#allocation2 + $0x74] sm:$0xf]  ;;  %v2106_v60 = vld [vmem:[#allocation2 + $0x78] sm:$0xf0] }
  0x1d   :  { %v2169_v61 = vor.u32 %v2710_v58, %v2168_v56  ;;  %v2109_v62 = vor.u32 %v2693_v59, %v2106_v60  ;;  %v2709_v63 = vld [vmem:[#allocation2 + $0xf4] sm:$0xf]  ;;  %v2687_v34 = vld [vmem:[#allocation2 + $0x44] sm:$0xf]  ;;  %v2064_v59 = vld [vmem:[#allocation2 + $0x20] sm:$0xf] }
  0x1e   :  { %510 = vmatpush.bf16.msra.mxu2 %v2105_v57  ;;  %v2701_v56 = vld [vmem:[#allocation2 + $0xb4] sm:$0xf]  ;;  %v2138_v57 = vld [vmem:[#allocation2 + $0xb8] sm:$0xf0]  ;;  %v2684_v60 = vld [vmem:[#allocation2 + $0x24] sm:$0xf0] }
  0x1f   :  { %v146_v0 = vld [vmem:[%s3504_s23 + $0x40] sm:$0x33]  ;;  %v2038_v3 = vld [vmem:[%s3504_s23 + $0x30] sm:$0xf]  ;;  %v2678_v6 = vld [vmem:[%s3504_s23 + $0x34] sm:$0xf0]  ;;  %524 = vmatpush.bf16.msra.mxu3 %v2169_v61  ;;  %v2141_v58 = vor.u32 %v2701_v56, %v2138_v57 }
  0x20   :  { %v178_v1 = vunpack.c.l.b16 %v146_v0  ;;  %v179_v2 = vunpack.c.h.b16 %v146_v0  ;;  %v2677_v7 = vld [vmem:[%s3504_s23 + $0x34] sm:$0xf]  ;;  %v2040_v8 = vld [vmem:[%s3504_s23 + $0x38] sm:$0xf0]  ;;  %v2039_v11 = vor.u32 %v2678_v6, %v2038_v3  ;;  %v2030_v13 = vld [vmem:[%s3504_s23 + $0x20] sm:$0xf] }
  0x21   :  { %v2043_v12 = vor.u32 %v2677_v7, %v2040_v8  ;;  %v2676_v14 = vld [vmem:[%s3504_s23 + $0x24] sm:$0xf0]  ;;  %v2675_v15 = vld [vmem:[%s3504_s23 + $0x24] sm:$0xf]  ;;  %v2032_v16 = vld [vmem:[%s3504_s23 + $0x28] sm:$0xf0] }
  0x22   :  { %v188_v4 = vpack.c.b16 %v178_v1, %v178_v1  ;;  %v189_v5 = vpack.c.b16 %v179_v2, %v179_v2  ;;  %v2031_v17 = vor.u32 %v2676_v14, %v2030_v13  ;;  %v2035_v18 = vor.u32 %v2675_v15, %v2032_v16  ;;  %v2022_v19 = vld [vmem:[%s3504_s23 + $0x10] sm:$0xf]  ;;  %v2674_v20 = vld [vmem:[%s3504_s23 + $0x14] sm:$0xf0]  ;;  %v2673_v21 = vld [vmem:[%s3504_s23 + $0x14] sm:$0xf]  ;;  %v3211_v1 = vpop.eup %2850 }
  0x23   :  { %v2024_v22 = vld [vmem:[%s3504_s23 + $0x18] sm:$0xf0]  ;;  %v2023_v23 = vor.u32 %v2674_v20, %v2022_v19  ;;  %v2014_v25 = vld [vmem:[%s3504_s23] sm:$0xf]  ;;  %v2672_v26 = vld [vmem:[%s3504_s23 + $0x4] sm:$0xf0]  ;;  %vm248_vm2 = vweird.f32 %v3211_v1 }
  0x24   :  { %v204_v9 = vsel %vm202_vm0, %v188_v4, 0  ;;  %v207_v10 = vsel %vm202_vm0, %v189_v5, 0  ;;  %v2027_v24 = vor.u32 %v2673_v21, %v2024_v22  ;;  %v2671_v27 = vld [vmem:[%s3504_s23 + $0x4] sm:$0xf]  ;;  %v2016_v28 = vld [vmem:[%s3504_s23 + $0x8] sm:$0xf0]  ;;  %v2015_v29 = vor.u32 %v2672_v26, %v2014_v25 }
  0x25   :  { %212 = vmatpush.bf16.msra.mxu0 %v204_v9  ;;  %226 = vmatpush.bf16.msra.mxu1 %v207_v10  ;;  %v2019_v30 = vor.u32 %v2671_v27, %v2016_v28  ;;  %v135_v31 = vld [vmem:[%s3505_s20] sm:$0xff]  ;;  %v136_v32 = vld [vmem:[%s3505_s20 + $0x8] sm:$0xff]  ;;  %v2170_v0 = vld [vmem:[#allocation2 + $0xf8] sm:$0xf0]  ;;  %v244_v10 = vmul.f32 256.0, %v3211_v1 }
  0x26   :  { %v137_v33 = vpack.c.bf16 %v136_v32, %v135_v31  ;;  %v2173_v2 = vor.u32 %v2709_v63, %v2170_v0  ;;  %v2096_v3 = vld [vmem:[#allocation2 + $0x60] sm:$0xf]  ;;  %v2692_v4 = vld [vmem:[#allocation2 + $0x64] sm:$0xf0]  ;;  %v2691_v8 = vld [vmem:[#allocation2 + $0x64] sm:$0xf] }
  0x27   :  { %v2160_v5 = vld [vmem:[#allocation2 + $0xe0] sm:$0xf]  ;;  %v2097_v6 = vor.u32 %v2692_v4, %v2096_v3  ;;  %v2708_v7 = vld [vmem:[#allocation2 + $0xe4] sm:$0xf0]  ;;  %v2098_v9 = vld [vmem:[#allocation2 + $0x68] sm:$0xf0] }
  0x28   :  { %v2707_v13 = vld [vmem:[#allocation2 + $0xe4] sm:$0xf]  ;;  %v2162_v14 = vld [vmem:[#allocation2 + $0xe8] sm:$0xf0]  ;;  %v2088_v16 = vld [vmem:[#allocation2 + $0x50] sm:$0xf] }
  0x29   :  { %213 = vmatpush.bf16.msra.mxu0 %v2039_v11  ;;  %227 = vmatpush.bf16.msra.mxu1 %v2043_v12  ;;  %v2161_v11 = vor.u32 %v2708_v7, %v2160_v5  ;;  %v2101_v12 = vor.u32 %v2691_v8, %v2098_v9  ;;  %v2165_v15 = vor.u32 %v2707_v13, %v2162_v14  ;;  %v2706_v20 = vld [vmem:[#allocation2 + $0xd4] sm:$0xf0]  ;;  %v2689_v21 = vld [vmem:[#allocation2 + $0x54] sm:$0xf]  ;;  %v2090_v22 = vld [vmem:[#allocation2 + $0x58] sm:$0xf0] }
  0x2a   :  { %511 = vmatpush.bf16.msra.mxu2 %v2097_v6  ;;  %v2093_v25 = vor.u32 %v2689_v21, %v2090_v22  ;;  %v2705_v26 = vld [vmem:[#allocation2 + $0xd4] sm:$0xf]  ;;  %v2154_v27 = vld [vmem:[#allocation2 + $0xd8] sm:$0xf0]  ;;  %v2144_v31 = vld [vmem:[#allocation2 + $0xc0] sm:$0xf] }
  0x2b   :  { %525 = vmatpush.bf16.msra.mxu3 %v2161_v11  ;;  %v2157_v28 = vor.u32 %v2705_v26, %v2154_v27  ;;  %v2128_v61 = vld [vmem:[#allocation2 + $0xa0] sm:$0xf]  ;;  %v2700_v63 = vld [vmem:[#allocation2 + $0xa4] sm:$0xf0]  ;;  %v2683_v0 = vld [vmem:[#allocation2 + $0x24] sm:$0xf] }
  0x2c   :  { %v2129_v4 = vor.u32 %v2700_v63, %v2128_v61  ;;  %v2699_v6 = vld [vmem:[#allocation2 + $0xa4] sm:$0xf]  ;;  %v2130_v7 = vld [vmem:[#allocation2 + $0xa8] sm:$0xf0]  ;;  %v2056_v8 = vld [vmem:[#allocation2 + $0x10] sm:$0xf] }
  0x2d   :  { %214 = vmatpush.bf16.msra.mxu0 %v2031_v17  ;;  %228 = vmatpush.bf16.msra.mxu1 %v2035_v18  ;;  %v2690_v17 = vld [vmem:[#allocation2 + $0x54] sm:$0xf0]  ;;  %v2152_v18 = vld [vmem:[#allocation2 + $0xd0] sm:$0xf]  ;;  %v2133_v9 = vor.u32 %v2699_v6, %v2130_v7  ;;  %v2048_v21 = vld [vmem:[#allocation2] sm:$0xf] }
  0x2e   :  { %v2089_v19 = vor.u32 %v2690_v17, %v2088_v16  ;;  %v2120_v11 = vld [vmem:[#allocation2 + $0x90] sm:$0xf]  ;;  %v2681_v16 = vld [vmem:[#allocation2 + $0x14] sm:$0xf]  ;;  %v2058_v17 = vld [vmem:[#allocation2 + $0x18] sm:$0xf0] }
  0x2f   :  { %v2680_v22 = vld [vmem:[#allocation2 + $0x4] sm:$0xf0]  ;;  %v2679_v27 = vld [vmem:[#allocation2 + $0x4] sm:$0xf] }
  0x30   :  { %512 = vmatpush.bf16.msra.mxu2 %v2089_v19  ;;  %v2061_v19 = vor.u32 %v2681_v16, %v2058_v17  ;;  %v2696_v26 = vld [vmem:[#allocation2 + $0x84] sm:$0xf0]  ;;  %v344_v16 = vld [vmem:[%s3486_s4] sm:$0x3] }
  0x31   :  { %215 = vmatpush.bf16.msra.mxu0 %v2023_v23  ;;  %229 = vmatpush.bf16.msra.mxu1 %v2027_v24  ;;  %v245_v23 = vsub.f32 1.0, %v244_v10  ;;  %v2153_v24 = vor.u32 %v2706_v20, %v2152_v18  ;;  %v2682_v10 = vld [vmem:[#allocation2 + $0x14] sm:$0xf0]  ;;  %v2697_v18 = vld [vmem:[#allocation2 + $0x94] sm:$0xf]  ;;  %v347_v17 = vperm.slane %v344_v16, 1 }
  0x32   :  { %v2057_v14 = vor.u32 %v2682_v10, %v2056_v8  ;;  %v2122_v20 = vld [vmem:[#allocation2 + $0x98] sm:$0xf0] }
  0x33   :  { %526 = vmatpush.bf16.msra.mxu3 %v2153_v24  ;;  %v2125_v24 = vor.u32 %v2697_v18, %v2122_v20 }
  0x35   :  { %216 = vmatpush.bf16.msra.mxu0 %v2015_v29  ;;  %230 = vmatpush.bf16.msra.mxu1 %v2019_v30  ;;  %v2080_v29 = vld [vmem:[#allocation2 + $0x40] sm:$0xf]  ;;  %v2688_v30 = vld [vmem:[#allocation2 + $0x44] sm:$0xf0] }
  0x36   :  { %v2081_v32 = vor.u32 %v2688_v30, %v2080_v29  ;;  %v2049_v30 = vor.u32 %v2680_v22, %v2048_v21 }
  0x38   :  { %2044 = vmatmul.msk.bf16.vlgmr.msra.gmra.mxu0 %vm198_vm1, %v137_v33  ;;  %2045 = vmatmul.msk.bf16.vlgmr.msra.gmra.mxu1 %vm198_vm1, %v137_v33  ;;  %v2704_v33 = vld [vmem:[#allocation2 + $0xc4] sm:$0xf0] }
  0x39   :  { %538 = vmatpush.bf16.msrb.mxu0 %v2109_v62  ;;  %552 = vmatpush.bf16.msrb.mxu1 %v2173_v2  ;;  %v2065_v62 = vor.u32 %v2684_v60, %v2064_v59  ;;  %v2066_v2 = vld [vmem:[#allocation2 + $0x28] sm:$0xf0] }
  0x3a   :  { %513 = vmatpush.bf16.msra.mxu2 %v2081_v32  ;;  %v2069_v5 = vor.u32 %v2683_v0, %v2066_v2  ;;  %v2695_v32 = vld [vmem:[#allocation2 + $0x84] sm:$0xf] }
  0x3d   :  { %539 = vmatpush.bf16.msrb.mxu0 %v2101_v12  ;;  %553 = vmatpush.bf16.msrb.mxu1 %v2165_v15  ;;  %v2698_v12 = vld [vmem:[#allocation2 + $0x94] sm:$0xf0] }
  0x3e   :  { %v2121_v15 = vor.u32 %v2698_v12, %v2120_v11 }
  0x41   :  { %540 = vmatpush.bf16.msrb.mxu0 %v2093_v25  ;;  %554 = vmatpush.bf16.msrb.mxu1 %v2157_v28  ;;  %v2112_v25 = vld [vmem:[#allocation2 + $0x80] sm:$0xf] }
  0xb5   :  { %v218_v37 = vpop.f32.mrf.mxu0  ;;  %v232_v38 = vpop.f32.mrf.mxu1 }
  0xb6   :  { %v3191_v39 = vadd.f32 %v218_v37, %v149_v35  ;;  %v3193_v40 = vadd.f32 %v232_v38, %v150_v36  ;;  %v2145_v37 = vor.u32 %v2704_v33, %v2144_v31  ;;  %v2050_v31 = vld [vmem:[#allocation2 + $0x8] sm:$0xf0] }
  0xb7   :  { %v2114_v33 = vld [vmem:[#allocation2 + $0x88] sm:$0xf0] }
  0xb8   :  { %v237_v41 = vadd.f32 %v3193_v40, %v3191_v39  ;;  %v252_v42 = vmul.f32 %v3191_v39, %v3191_v39  ;;  %v253_v43 = vmul.f32 %v3193_v40, %v3193_v40  ;;  %527 = vmatpush.bf16.msra.mxu3 %v2145_v37  ;;  %v2117_v37 = vor.u32 %v2695_v32, %v2114_v33 }
  0xba   :  { %238 = vadd.xlane.f32.xlu0 %v237_v41  ;;  %v256_v44 = vadd.f32 %v253_v43, %v252_v42  ;;  %v2703_v41 = vld [vmem:[#allocation2 + $0xc4] sm:$0xf]  ;;  %v2146_v42 = vld [vmem:[#allocation2 + $0xc8] sm:$0xf0] }
  0xbb   :  { %v2149_v43 = vor.u32 %v2703_v41, %v2146_v42 }
  0xbc   :  { %257 = vadd.xlane.f32.xlu1 %v256_v44  ;;  %v2072_v44 = vld [vmem:[#allocation2 + $0x30] sm:$0xf] }
  0xbd   :  { %v220_v45 = vpop.f32.mrf.mxu0  ;;  %v234_v46 = vpop.f32.mrf.mxu1  ;;  %555 = vmatpush.bf16.msrb.mxu1 %v2149_v43 }
  0xbe   :  { %v3201_v47 = vadd.f32 %v220_v45, %v149_v35  ;;  %v3203_v48 = vadd.f32 %v234_v46, %v150_v36  ;;  %v2082_v35 = vld [vmem:[#allocation2 + $0x48] sm:$0xf0]  ;;  %v246_v36 = vmul.f32 %v3211_v1, %v245_v23  ;;  %v2686_v45 = vld [vmem:[#allocation2 + $0x34] sm:$0xf0]  ;;  %v2136_v46 = vld [vmem:[#allocation2 + $0xb0] sm:$0xf] }
  0xbf   :  { %v2085_v38 = vor.u32 %v2687_v34, %v2082_v35  ;;  %v2113_v34 = vor.u32 %v2696_v26, %v2112_v25  ;;  %v2053_v35 = vor.u32 %v2679_v27, %v2050_v31 }
  0xc0   :  { %v240_v49 = vadd.f32 %v3203_v48, %v3201_v47  ;;  %v254_v50 = vmul.f32 %v3201_v47, %v3201_v47  ;;  %v255_v51 = vmul.f32 %v3203_v48, %v3203_v48  ;;  %v247_v53 = vadd.f32 %v3211_v1, %v246_v36 }
  0xc1   :  { %541 = vmatpush.bf16.msrb.mxu0 %v2085_v38  ;;  %556 = vmatpush.bf16.msrb.mxu1 %v2141_v58 }
  0xc2   :  { %241 = vadd.xlane.f32.xlu0 %v240_v49  ;;  %v259_v52 = vadd.f32 %v255_v51, %v254_v50  ;;  %v2073_v49 = vor.u32 %v2686_v45, %v2072_v44  ;;  %v2702_v50 = vld [vmem:[#allocation2 + $0xb4] sm:$0xf0]  ;;  %v2685_v51 = vld [vmem:[#allocation2 + $0x34] sm:$0xf]  ;;  %v3218_v3 = vsel %vm248_vm2, %v3211_v1, %v247_v53 }
  0xc3   :  { %v2137_v54 = vor.u32 %v2702_v50, %v2136_v46 }
  0xc4   :  { %260 = vadd.xlane.f32.xlu1 %v259_v52  ;;  %v2074_v52 = vld [vmem:[#allocation2 + $0x38] sm:$0xf0]  ;;  %514 = vmatpush.bf16.msra.mxu2 %v2073_v49 }
  0xc5   :  { %v2077_v55 = vor.u32 %v2685_v51, %v2074_v52  ;;  %528 = vmatpush.bf16.msra.mxu3 %v2137_v54  ;;  %557 = vmatpush.bf16.msrb.mxu1 %v2133_v9 }
  0xc7   :  { %542 = vmatpush.bf16.msrb.mxu0 %v2077_v55 }
  0xc8   :  { %515 = vmatpush.bf16.msra.mxu2 %v2065_v62 }
  0xc9   :  { %529 = vmatpush.bf16.msra.mxu3 %v2129_v4  ;;  %558 = vmatpush.bf16.msrb.mxu1 %v2125_v24 }
  0xcb   :  { %543 = vmatpush.bf16.msrb.mxu0 %v2069_v5 }
  0xcc   :  { %516 = vmatpush.bf16.msra.mxu2 %v2057_v14 }
  0xcd   :  { %530 = vmatpush.bf16.msra.mxu3 %v2121_v15  ;;  %559 = vmatpush.bf16.msrb.mxu1 %v2117_v37 }
  0xcf   :  { %544 = vmatpush.bf16.msrb.mxu0 %v2061_v19  ;;  %v346_v19 = vperm.slane %v344_v16, 0 }
  0xd0   :  { %517 = vmatpush.bf16.msra.mxu2 %v2049_v30 }
  0xd1   :  { %531 = vmatpush.bf16.msra.mxu3 %v2113_v34 }
  0xd3   :  { %545 = vmatpush.bf16.msrb.mxu0 %v2053_v35 }
 0x12d   :  { %v239_v13 = vpop.xlane.xlu0 %238 }
 0x12e   :  { %v250_v1 = vmul.f32 %v3218_v3, %v239_v13 }
 0x12f   :  { %v258_v23 = vpop.xlane.xlu1 %257 }
 0x130   :  { %v262_v28 = vmul.f32 %v258_v23, %v3218_v3  ;;  %v268_v29 = vmul.f32 %v250_v1, %v250_v1  ;;  %v264_v61 = vsub.f32 %v3191_v39, %v250_v1  ;;  %v265_v62 = vsub.f32 %v3193_v40, %v250_v1 }
 0x132   :  { %v270_v36 = vsub.f32 %v262_v28, %v268_v29 }
 0x134   :  { %v272_v38 = vadd.f32 1e-05, %v270_v36 }
 0x135   :  { %v242_v41 = vpop.xlane.xlu0 %241 }
 0x136   :  { %2852 = vrsqrt.f32 %v272_v38  ;;  %v251_v42 = vmul.f32 %v3218_v3, %v242_v41  ;;  %vm280_vm4 = vweird.f32 %v272_v38 }
 0x137   :  { %v261_v43 = vpop.xlane.xlu1 %260 }
 0x138   :  { %v263_v44 = vmul.f32 %v261_v43, %v3218_v3  ;;  %v269_v45 = vmul.f32 %v251_v42, %v251_v42  ;;  %v266_v5 = vsub.f32 %v3201_v47, %v251_v42  ;;  %v267_v6 = vsub.f32 %v3203_v48, %v251_v42 }
 0x13a   :  { %v271_v46 = vsub.f32 %v263_v44, %v269_v45  ;;  %v2232_v44 = vld [vmem:[#allocation4 + $0x70] sm:$0xf]  ;;  %v2726_v45 = vld [vmem:[#allocation4 + $0x74] sm:$0xf0] }
 0x13c   :  { %v2853_v49 = vpop.eup %2852  ;;  %v273_v50 = vadd.f32 1e-05, %v271_v46  ;;  %v2296_v46 = vld [vmem:[#allocation4 + $0xf0] sm:$0xf] }
 0x13d   :  { %v275_v51 = vmul.f32 %v2853_v49, %v272_v38  ;;  %vm281_vm3 = vweird.f32 %v2853_v49 }
 0x13e   :  { %2854 = vrsqrt.f32 %v273_v50  ;;  %vm282_vm5 = vmor %vm280_vm4, %vm281_vm3  ;;  %vm290_vm7 = vweird.f32 %v273_v50 }
 0x13f   :  { %v276_v52 = vmul.f32 %v2853_v49, %v275_v51  ;;  %v2725_v51 = vld [vmem:[#allocation4 + $0x74] sm:$0xf] }
 0x141   :  { %v277_v53 = vmul.f32 0.5, %v276_v52  ;;  %v2234_v52 = vld [vmem:[#allocation4 + $0x78] sm:$0xf0] }
 0x143   :  { %v278_v54 = vsub.f32 1.5, %v277_v53 }
 0x144   :  { %v2855_v55 = vpop.eup %2854 }
 0x145   :  { %v285_v56 = vmul.f32 %v2855_v55, %v273_v50  ;;  %v279_v57 = vmul.f32 %v2853_v49, %v278_v54  ;;  %vm291_vm6 = vweird.f32 %v2855_v55  ;;  %v2742_v50 = vld [vmem:[#allocation4 + $0xf4] sm:$0xf0]  ;;  %v2237_v54 = vor.u32 %v2725_v51, %v2234_v52  ;;  %v2192_v51 = vld [vmem:[#allocation4 + $0x20] sm:$0xf]  ;;  %v2716_v52 = vld [vmem:[#allocation4 + $0x24] sm:$0xf0] }
 0x146   :  { %vm292_vm8 = vmor %vm290_vm7, %vm291_vm6  ;;  %v2297_v53 = vor.u32 %v2742_v50, %v2296_v46  ;;  %v2733_v46 = vld [vmem:[#allocation4 + $0xb4] sm:$0xf] }
 0x147   :  { %v286_v58 = vmul.f32 %v2855_v55, %v285_v56  ;;  %v283_v60 = vsel %vm282_vm5, %v2853_v49, %v279_v57  ;;  %v2233_v49 = vor.u32 %v2726_v45, %v2232_v44  ;;  %v2298_v56 = vld [vmem:[#allocation4 + $0xf8] sm:$0xf0]  ;;  %860 = vmatpush.bf16.msra.mxu0 %v2237_v54  ;;  %v2193_v54 = vor.u32 %v2716_v52, %v2192_v51 }
 0x148   :  { %v294_v0 = vmul.f32 %v283_v60, %v264_v61  ;;  %v295_v2 = vmul.f32 %v283_v60, %v265_v62  ;;  %846 = vmatpush.bf16.msrb.mxu3 %v2297_v53  ;;  %v2288_v60 = vld [vmem:[#allocation4 + $0xe0] sm:$0xf]  ;;  %v2740_v62 = vld [vmem:[#allocation4 + $0xe4] sm:$0xf0] }
 0x149   :  { %v287_v59 = vmul.f32 0.5, %v286_v58  ;;  %832 = vmatpush.bf16.msrb.mxu2 %v2233_v49  ;;  %v2224_v58 = vld [vmem:[#allocation4 + $0x60] sm:$0xf]  ;;  %v2266_v49 = vld [vmem:[#allocation4 + $0xb8] sm:$0xf0] }
 0x14a   :  { %v302_v9 = vmul.f32 0.2, %v294_v0  ;;  %v303_v11 = vmul.f32 0.2, %v295_v2  ;;  %vm298_vm9 = vcmp.ge.f32.partialorder %v294_v0, 0.0  ;;  %vm299_vm10 = vcmp.ge.f32.partialorder %v295_v2, 0.0 }
 0x14b   :  { %v288_v63 = vsub.f32 1.5, %v287_v59  ;;  %v2724_v59 = vld [vmem:[#allocation4 + $0x64] sm:$0xf0]  ;;  %v2269_v50 = vor.u32 %v2733_v46, %v2266_v49  ;;  %v2256_v53 = vld [vmem:[#allocation4 + $0xa0] sm:$0xf] }
 0x14c   :  { %v3228_v12 = vsel %vm298_vm9, %v294_v0, %v302_v9  ;;  %v3232_v14 = vsel %vm299_vm10, %v295_v2, %v303_v11  ;;  %v2225_v61 = vor.u32 %v2724_v59, %v2224_v58  ;;  %v2226_v0 = vld [vmem:[#allocation4 + $0x68] sm:$0xf0]  ;;  %v2289_v2 = vor.u32 %v2740_v62, %v2288_v60  ;;  %v2722_v9 = vld [vmem:[#allocation4 + $0x54] sm:$0xf0]  ;;  %v2731_v60 = vld [vmem:[#allocation4 + $0xa4] sm:$0xf] }
 0x14d   :  { %v289_v4 = vmul.f32 %v2855_v55, %v288_v63  ;;  %v2723_v63 = vld [vmem:[#allocation4 + $0x64] sm:$0xf] }
 0x14e   :  { %833 = vmatpush.bf16.msrb.mxu2 %v2225_v61  ;;  %847 = vmatpush.bf16.msrb.mxu3 %v2289_v2  ;;  %v2258_v61 = vld [vmem:[#allocation4 + $0xa8] sm:$0xf0]  ;;  %v2714_v2 = vld [vmem:[#allocation4 + $0x14] sm:$0xf0] }
 0x14f   :  { %v293_v7 = vsel %vm292_vm8, %v2855_v55, %v289_v4  ;;  %v2741_v55 = vld [vmem:[#allocation4 + $0xf4] sm:$0xf]  ;;  %v2229_v4 = vor.u32 %v2723_v63, %v2226_v0  ;;  %v2261_v63 = vor.u32 %v2731_v60, %v2258_v61  ;;  %v2184_v0 = vld [vmem:[#allocation4 + $0x10] sm:$0xf] }
 0x150   :  { %v296_v8 = vmul.f32 %v293_v7, %v266_v5  ;;  %v297_v10 = vmul.f32 %v293_v7, %v267_v6  ;;  %v2301_v57 = vor.u32 %v2741_v55, %v2298_v56  ;;  %v2739_v5 = vld [vmem:[#allocation4 + $0xe4] sm:$0xf]  ;;  %v2290_v6 = vld [vmem:[#allocation4 + $0xe8] sm:$0xf0]  ;;  %v2732_v55 = vld [vmem:[#allocation4 + $0xa4] sm:$0xf0] }
 0x151   :  { %v2293_v7 = vor.u32 %v2739_v5, %v2290_v6  ;;  %861 = vmatpush.bf16.msra.mxu0 %v2229_v4  ;;  %v2715_v56 = vld [vmem:[#allocation4 + $0x24] sm:$0xf]  ;;  %v2257_v58 = vor.u32 %v2732_v55, %v2256_v53  ;;  %v2248_v4 = vld [vmem:[#allocation4 + $0x90] sm:$0xf]  ;;  %v2185_v6 = vor.u32 %v2714_v2, %v2184_v0 }
 0x152   :  { %vm300_vm11 = vcmp.ge.f32.partialorder %v296_v8, 0.0  ;;  %v304_v39 = vmul.f32 0.2, %v296_v8  ;;  %vm301_vm12 = vcmp.ge.f32.partialorder %v297_v10, 0.0  ;;  %v305_v40 = vmul.f32 0.2, %v297_v10  ;;  %874 = vmatpush.bf16.msra.mxu1 %v2301_v57 }
 0x153   :  { %v2194_v57 = vld [vmem:[#allocation4 + $0x28] sm:$0xf0] }
 0x154   :  { %v3230_v13 = vsel %vm300_vm11, %v296_v8, %v304_v39  ;;  %v3234_v47 = vsel %vm301_vm12, %v297_v10, %v305_v40  ;;  %v2216_v8 = vld [vmem:[#allocation4 + $0x50] sm:$0xf]  ;;  %v2738_v39 = vld [vmem:[#allocation4 + $0xd4] sm:$0xf0]  ;;  %v2721_v40 = vld [vmem:[#allocation4 + $0x54] sm:$0xf]  ;;  %v2197_v59 = vor.u32 %v2715_v56, %v2194_v57 }
 0x155   :  { %v310_v48 = vpack.c.bf16 %v3230_v13, %v3228_v12  ;;  %v311_v15 = vpack.c.bf16 %v3234_v47, %v3232_v14  ;;  %v2280_v10 = vld [vmem:[#allocation4 + $0xd0] sm:$0xf]  ;;  %v2217_v11 = vor.u32 %v2722_v9, %v2216_v8  ;;  %v2713_v8 = vld [vmem:[#allocation4 + $0x14] sm:$0xf]  ;;  %v2186_v9 = vld [vmem:[#allocation4 + $0x18] sm:$0xf0] }
 0x156   :  { %875 = vmatpush.bf16.msra.mxu1 %v2293_v7  ;;  %v2730_v7 = vld [vmem:[#allocation4 + $0x94] sm:$0xf0] }
 0x157   :  { %518 = vmatmul.bf16.vlgmr.msra.gmra.mxu2 %v310_v48  ;;  %532 = vmatmul.bf16.vlgmr.msra.gmra.mxu3 %v311_v15 }
 0x158   :  { %546 = vmatmul.bf16.vlgmr.msrb.gmra.mxu0 %v310_v48  ;;  %560 = vmatmul.bf16.vlgmr.msrb.gmra.mxu1 %v311_v15  ;;  %v2218_v48 = vld [vmem:[#allocation4 + $0x58] sm:$0xf0]  ;;  %v2281_v15 = vor.u32 %v2738_v39, %v2280_v10  ;;  %v2189_v39 = vor.u32 %v2713_v8, %v2186_v9 }
 0x159   :  { %v2221_v16 = vor.u32 %v2721_v40, %v2218_v48  ;;  %834 = vmatpush.bf16.msrb.mxu2 %v2217_v11  ;;  %v2249_v11 = vor.u32 %v2730_v7, %v2248_v4  ;;  %v2729_v40 = vld [vmem:[#allocation4 + $0x94] sm:$0xf]  ;;  %v2250_v48 = vld [vmem:[#allocation4 + $0x98] sm:$0xf0] }
 0x15a   :  { %848 = vmatpush.bf16.msrb.mxu3 %v2281_v15  ;;  %v2176_v15 = vld [vmem:[#allocation4] sm:$0xf] }
 0x15b   :  { %862 = vmatpush.bf16.msra.mxu0 %v2221_v16 }
 0x1d5   :  { %v547_v18 = vpop.f32.mrf.mxu0  ;;  %v561_v20 = vpop.f32.mrf.mxu1 }
 0x1d6   :  { %v548_v1 = vadd.f32 %v547_v18, %v347_v17  ;;  %v2282_v18 = vld [vmem:[#allocation4 + $0xd8] sm:$0xf0] }
 0x1d8   :  { %v3243_v23 = vadd.f32 %v561_v20, %v548_v1  ;;  %v2720_v20 = vld [vmem:[#allocation4 + $0x44] sm:$0xf0] }
 0x1da   :  { %v519_v21 = vpop.f32.mrf.mxu2  ;;  %v533_v22 = vpop.f32.mrf.mxu3  ;;  %v575_v30 = vmul.f32 %v3243_v23, %v3243_v23 }
 0x1db   :  { %v520_v24 = vadd.f32 %v519_v21, %v346_v19  ;;  %v2272_v21 = vld [vmem:[#allocation4 + $0xc0] sm:$0xf] }
 0x1dd   :  { %v3245_v25 = vadd.f32 %v533_v22, %v520_v24  ;;  %v549_v26 = vpop.f32.mrf.mxu0  ;;  %v563_v32 = vpop.f32.mrf.mxu1  ;;  %v2736_v24 = vld [vmem:[#allocation4 + $0xc4] sm:$0xf0] }
 0x1de   :  { %v550_v27 = vadd.f32 %v549_v26, %v347_v17  ;;  %v2737_v17 = vld [vmem:[#allocation4 + $0xd4] sm:$0xf]  ;;  %v2719_v26 = vld [vmem:[#allocation4 + $0x44] sm:$0xf] }
 0x1df   :  { %v566_v28 = vadd.f32 %v3243_v23, %v3245_v25  ;;  %v574_v29 = vmul.f32 %v3245_v25, %v3245_v25  ;;  %v2285_v1 = vor.u32 %v2737_v17, %v2282_v18  ;;  %v2712_v18 = vld [vmem:[#allocation4 + $0x4] sm:$0xf0] }
 0x1e0   :  { %v3253_v34 = vadd.f32 %v563_v32, %v550_v27  ;;  %v2210_v27 = vld [vmem:[#allocation4 + $0x48] sm:$0xf0] }
 0x1e1   :  { %567 = vadd.xlane.f32.xlu2 %v566_v28  ;;  %v578_v31 = vadd.f32 %v575_v30, %v574_v29  ;;  %876 = vmatpush.bf16.msra.mxu1 %v2285_v1  ;;  %v2273_v28 = vor.u32 %v2736_v24, %v2272_v21  ;;  %v2213_v29 = vor.u32 %v2719_v26, %v2210_v27  ;;  %v2735_v30 = vld [vmem:[#allocation4 + $0xc4] sm:$0xf]  ;;  %v2240_v1 = vld [vmem:[#allocation4 + $0x80] sm:$0xf]  ;;  %v2178_v24 = vld [vmem:[#allocation4 + $0x8] sm:$0xf0] }
 0x1e2   :  { %v521_v33 = vpop.f32.mrf.mxu2  ;;  %v535_v36 = vpop.f32.mrf.mxu3  ;;  %v577_v42 = vmul.f32 %v3253_v34, %v3253_v34  ;;  %v2177_v21 = vor.u32 %v2712_v18, %v2176_v15  ;;  %v2727_v26 = vld [vmem:[#allocation4 + $0x84] sm:$0xf] }
 0x1e3   :  { %v522_v35 = vadd.f32 %v521_v33, %v346_v19  ;;  %579 = vadd.xlane.f32.xlu0 %v578_v31  ;;  %v2208_v19 = vld [vmem:[#allocation4 + $0x40] sm:$0xf]  ;;  %v2274_v31 = vld [vmem:[#allocation4 + $0xc8] sm:$0xf0]  ;;  %849 = vmatpush.bf16.msrb.mxu3 %v2273_v28  ;;  %v2200_v33 = vld [vmem:[#allocation4 + $0x30] sm:$0xf] }
 0x1e4   :  { %v2209_v22 = vor.u32 %v2720_v20, %v2208_v19  ;;  %v2277_v32 = vor.u32 %v2735_v30, %v2274_v31  ;;  %863 = vmatpush.bf16.msra.mxu0 %v2213_v29  ;;  %v2728_v19 = vld [vmem:[#allocation4 + $0x84] sm:$0xf0]  ;;  %v2253_v20 = vor.u32 %v2729_v40, %v2250_v48  ;;  %v2242_v30 = vld [vmem:[#allocation4 + $0x88] sm:$0xf0] }
 0x1e5   :  { %v3255_v37 = vadd.f32 %v535_v36, %v522_v35  ;;  %v2718_v35 = vld [vmem:[#allocation4 + $0x34] sm:$0xf0]  ;;  %v2264_v36 = vld [vmem:[#allocation4 + $0xb0] sm:$0xf]  ;;  %v2241_v28 = vor.u32 %v2728_v19, %v2240_v1  ;;  %v2245_v31 = vor.u32 %v2727_v26, %v2242_v30 }
 0x1e6   :  { %835 = vmatpush.bf16.msrb.mxu2 %v2209_v22  ;;  %877 = vmatpush.bf16.msra.mxu1 %v2277_v32  ;;  %v2711_v22 = vld [vmem:[#allocation4 + $0x4] sm:$0xf] }
 0x1e7   :  { %v569_v38 = vadd.f32 %v3253_v34, %v3255_v37  ;;  %v576_v41 = vmul.f32 %v3255_v37, %v3255_v37  ;;  %v2181_v29 = vor.u32 %v2711_v22, %v2178_v24 }
 0x1e9   :  { %570 = vadd.xlane.f32.xlu2 %v569_v38  ;;  %v581_v43 = vadd.f32 %v577_v42, %v576_v41  ;;  %v2201_v38 = vor.u32 %v2718_v35, %v2200_v33  ;;  %v2734_v41 = vld [vmem:[#allocation4 + $0xb4] sm:$0xf0]  ;;  %v2717_v42 = vld [vmem:[#allocation4 + $0x34] sm:$0xf] }
 0x1ea   :  { %v2265_v44 = vor.u32 %v2734_v41, %v2264_v36  ;;  %878 = vmatpush.bf16.msra.mxu1 %v2269_v50 }
 0x1eb   :  { %582 = vadd.xlane.f32.xlu1 %v581_v43  ;;  %v2202_v43 = vld [vmem:[#allocation4 + $0x38] sm:$0xf0]  ;;  %836 = vmatpush.bf16.msrb.mxu2 %v2201_v38 }
 0x1ec   :  { %v2205_v45 = vor.u32 %v2717_v42, %v2202_v43  ;;  %850 = vmatpush.bf16.msrb.mxu3 %v2265_v44 }
 0x1ee   :  { %864 = vmatpush.bf16.msra.mxu0 %v2205_v45  ;;  %879 = vmatpush.bf16.msra.mxu1 %v2261_v63 }
 0x1ef   :  { %837 = vmatpush.bf16.msrb.mxu2 %v2193_v54 }
 0x1f0   :  { %851 = vmatpush.bf16.msrb.mxu3 %v2257_v58 }
 0x1f2   :  { %865 = vmatpush.bf16.msra.mxu0 %v2197_v59  ;;  %880 = vmatpush.bf16.msra.mxu1 %v2253_v20 }
 0x1f3   :  { %838 = vmatpush.bf16.msrb.mxu2 %v2185_v6 }
 0x1f4   :  { %852 = vmatpush.bf16.msrb.mxu3 %v2249_v11 }
 0x1f6   :  { %866 = vmatpush.bf16.msra.mxu0 %v2189_v39  ;;  %881 = vmatpush.bf16.msra.mxu1 %v2245_v31 }
 0x1f7   :  { %839 = vmatpush.bf16.msrb.mxu2 %v2177_v21 }
 0x1f8   :  { %853 = vmatpush.bf16.msrb.mxu3 %v2241_v28 }
 0x1fa   :  { %867 = vmatpush.bf16.msra.mxu0 %v2181_v29 }
 0x254   :  { %v568_v62 = vpop.xlane.xlu2 %567 }
 0x255   :  { %v3264_v5 = vmul.f32 %v568_v62, %v3218_v3 }
 0x256   :  { %v580_v10 = vpop.xlane.xlu0 %579 }
 0x257   :  { %v584_v16 = vmul.f32 %v580_v10, %v3218_v3  ;;  %v590_v17 = vmul.f32 %v3264_v5, %v3264_v5  ;;  %v586_v57 = vsub.f32 %v3245_v25, %v3264_v5  ;;  %v587_v58 = vsub.f32 %v3243_v23, %v3264_v5 }
 0x259   :  { %v592_v27 = vsub.f32 %v584_v16, %v590_v17 }
 0x25b   :  { %v594_v32 = vadd.f32 1e-05, %v592_v27 }
 0x25c   :  { %v571_v33 = vpop.xlane.xlu2 %570 }
 0x25d   :  { %2856 = vrsqrt.f32 %v594_v32  ;;  %v573_v35 = vmul.f32 %v571_v33, %v3218_v3  ;;  %vm602_vm14 = vweird.f32 %v594_v32 }
 0x25e   :  { %v583_v36 = vpop.xlane.xlu1 %582 }
 0x25f   :  { %v585_v38 = vmul.f32 %v583_v36, %v3218_v3  ;;  %v591_v41 = vmul.f32 %v573_v35, %v573_v35  ;;  %v588_v63 = vsub.f32 %v3255_v37, %v573_v35  ;;  %v589_v0 = vsub.f32 %v3253_v34, %v573_v35  ;;  %v666_v34 = vld [vmem:[%s3488_s6] sm:$0x3] }
 0x260   :  { %v669_v40 = vperm.slane %v666_v34, 1  ;;  %v668_v16 = vperm.slane %v666_v34, 0 }
 0x261   :  { %v593_v42 = vsub.f32 %v585_v38, %v591_v41 }
 0x263   :  { %v2857_v43 = vpop.eup %2856  ;;  %v595_v44 = vadd.f32 1e-05, %v593_v42 }
 0x264   :  { %v597_v45 = vmul.f32 %v2857_v43, %v594_v32  ;;  %vm603_vm13 = vweird.f32 %v2857_v43 }
 0x265   :  { %2858 = vrsqrt.f32 %v595_v44  ;;  %vm604_vm15 = vmor %vm602_vm14, %vm603_vm13  ;;  %vm612_vm1 = vweird.f32 %v595_v44 }
 0x266   :  { %v598_v46 = vmul.f32 %v2857_v43, %v597_v45  ;;  %v2758_v45 = vld [vmem:[#allocation6 + $0x74] sm:$0xf0] }
 0x268   :  { %v599_v49 = vmul.f32 0.5, %v598_v46  ;;  %v2424_v46 = vld [vmem:[#allocation6 + $0xf0] sm:$0xf] }
 0x26a   :  { %v600_v50 = vsub.f32 1.5, %v599_v49 }
 0x26b   :  { %v2859_v51 = vpop.eup %2858 }
 0x26c   :  { %v601_v52 = vmul.f32 %v2857_v43, %v600_v50  ;;  %v607_v53 = vmul.f32 %v2859_v51, %v595_v44  ;;  %vm613_vm0 = vweird.f32 %v2859_v51  ;;  %v2360_v44 = vld [vmem:[#allocation6 + $0x70] sm:$0xf]  ;;  %v2774_v50 = vld [vmem:[#allocation6 + $0xf4] sm:$0xf0] }
 0x26d   :  { %vm614_vm2 = vmor %vm612_vm1, %vm613_vm0  ;;  %v2361_v49 = vor.u32 %v2758_v45, %v2360_v44 }
 0x26e   :  { %v608_v54 = vmul.f32 %v2859_v51, %v607_v53  ;;  %v605_v56 = vsel %vm604_vm15, %v2857_v43, %v601_v52  ;;  %v2362_v52 = vld [vmem:[#allocation6 + $0x78] sm:$0xf0]  ;;  %v2425_v53 = vor.u32 %v2774_v50, %v2424_v46  ;;  %v2765_v46 = vld [vmem:[#allocation6 + $0xb4] sm:$0xf] }
 0x26f   :  { %v616_v60 = vmul.f32 %v605_v56, %v586_v57  ;;  %v617_v61 = vmul.f32 %v605_v56, %v587_v58  ;;  %v2426_v56 = vld [vmem:[#allocation6 + $0xf8] sm:$0xf0]  ;;  %1146 = vmatpush.bf16.msra.mxu2 %v2361_v49  ;;  %v2352_v58 = vld [vmem:[#allocation6 + $0x60] sm:$0xf] }
 0x270   :  { %v609_v55 = vmul.f32 0.5, %v608_v54  ;;  %1160 = vmatpush.bf16.msra.mxu3 %v2425_v53  ;;  %v2394_v49 = vld [vmem:[#allocation6 + $0xb8] sm:$0xf0]  ;;  %v2384_v53 = vld [vmem:[#allocation6 + $0xa0] sm:$0xf] }
 0x271   :  { %v624_v6 = vmul.f32 0.2, %v616_v60  ;;  %v625_v8 = vmul.f32 0.2, %v617_v61  ;;  %vm620_vm3 = vcmp.ge.f32.partialorder %v616_v60, 0.0  ;;  %vm621_vm4 = vcmp.ge.f32.partialorder %v617_v61, 0.0 }
 0x272   :  { %v610_v59 = vsub.f32 1.5, %v609_v55  ;;  %v2773_v55 = vld [vmem:[#allocation6 + $0xf4] sm:$0xf]  ;;  %v2397_v50 = vor.u32 %v2765_v46, %v2394_v49 }
 0x273   :  { %v628_v5 = vsel %vm620_vm3, %v616_v60, %v624_v6  ;;  %v629_v10 = vsel %vm621_vm4, %v617_v61, %v625_v8  ;;  %v2429_v57 = vor.u32 %v2773_v55, %v2426_v56  ;;  %v2416_v60 = vld [vmem:[#allocation6 + $0xe0] sm:$0xf]  ;;  %v2771_v6 = vld [vmem:[#allocation6 + $0xe4] sm:$0xf]  ;;  %v2764_v55 = vld [vmem:[#allocation6 + $0xa4] sm:$0xf0] }
 0x274   :  { %v611_v62 = vmul.f32 %v2859_v51, %v610_v59  ;;  %v2756_v59 = vld [vmem:[#allocation6 + $0x64] sm:$0xf0]  ;;  %v2747_v56 = vld [vmem:[#allocation6 + $0x24] sm:$0xf] }
 0x275   :  { %1188 = vmatpush.bf16.msrb.mxu1 %v2429_v57  ;;  %v2353_v61 = vor.u32 %v2756_v59, %v2352_v58  ;;  %v2322_v57 = vld [vmem:[#allocation6 + $0x28] sm:$0xf0]  ;;  %v2385_v58 = vor.u32 %v2764_v55, %v2384_v53 }
 0x276   :  { %v615_v2 = vsel %vm614_vm2, %v2859_v51, %v611_v62  ;;  %v2757_v51 = vld [vmem:[#allocation6 + $0x74] sm:$0xf]  ;;  %v2772_v62 = vld [vmem:[#allocation6 + $0xe4] sm:$0xf0]  ;;  %v2325_v59 = vor.u32 %v2747_v56, %v2322_v57 }
 0x277   :  { %v618_v4 = vmul.f32 %v615_v2, %v588_v63  ;;  %v619_v7 = vmul.f32 %v615_v2, %v589_v0  ;;  %v2365_v54 = vor.u32 %v2757_v51, %v2362_v52  ;;  %v2755_v63 = vld [vmem:[#allocation6 + $0x64] sm:$0xf]  ;;  %v2354_v0 = vld [vmem:[#allocation6 + $0x68] sm:$0xf0]  ;;  %v2417_v2 = vor.u32 %v2772_v62, %v2416_v60  ;;  %1147 = vmatpush.bf16.msra.mxu2 %v2353_v61  ;;  %v2320_v51 = vld [vmem:[#allocation6 + $0x20] sm:$0xf] }
 0x278   :  { %v2748_v52 = vld [vmem:[#allocation6 + $0x24] sm:$0xf0]  ;;  %v2763_v60 = vld [vmem:[#allocation6 + $0xa4] sm:$0xf]  ;;  %v2386_v61 = vld [vmem:[#allocation6 + $0xa8] sm:$0xf0] }
 0x279   :  { %vm622_vm5 = vcmp.ge.f32.partialorder %v618_v4, 0.0  ;;  %v626_v23 = vmul.f32 0.2, %v618_v4  ;;  %vm623_vm6 = vcmp.ge.f32.partialorder %v619_v7, 0.0  ;;  %v627_v25 = vmul.f32 0.2, %v619_v7  ;;  %1174 = vmatpush.bf16.msrb.mxu0 %v2365_v54  ;;  %1161 = vmatpush.bf16.msra.mxu3 %v2417_v2 }
 0x27a   :  { %v2321_v54 = vor.u32 %v2748_v52, %v2320_v51  ;;  %v2389_v62 = vor.u32 %v2763_v60, %v2386_v61  ;;  %v2746_v2 = vld [vmem:[#allocation6 + $0x14] sm:$0xf0] }
 0x27b   :  { %v630_v9 = vsel %vm622_vm5, %v618_v4, %v626_v23  ;;  %v631_v11 = vsel %vm623_vm6, %v619_v7, %v627_v25  ;;  %v2357_v4 = vor.u32 %v2755_v63, %v2354_v0  ;;  %v2418_v7 = vld [vmem:[#allocation6 + $0xe8] sm:$0xf0]  ;;  %v2344_v23 = vld [vmem:[#allocation6 + $0x50] sm:$0xf]  ;;  %v2754_v25 = vld [vmem:[#allocation6 + $0x54] sm:$0xf0] }
 0x27c   :  { %v632_v39 = vpack.c.bf16 %v630_v9, %v628_v5  ;;  %v633_v37 = vpack.c.bf16 %v631_v11, %v629_v10  ;;  %v2421_v8 = vor.u32 %v2771_v6, %v2418_v7  ;;  %v2408_v5 = vld [vmem:[#allocation6 + $0xd0] sm:$0xf]  ;;  %v2345_v9 = vor.u32 %v2754_v25, %v2344_v23  ;;  %v2770_v10 = vld [vmem:[#allocation6 + $0xd4] sm:$0xf0]  ;;  %v2753_v11 = vld [vmem:[#allocation6 + $0x54] sm:$0xf] }
 0x27d   :  { %1175 = vmatpush.bf16.msrb.mxu0 %v2357_v4  ;;  %v2312_v0 = vld [vmem:[#allocation6 + $0x10] sm:$0xf]  ;;  %v2745_v23 = vld [vmem:[#allocation6 + $0x14] sm:$0xf]  ;;  %v2314_v25 = vld [vmem:[#allocation6 + $0x18] sm:$0xf0] }
 0x27e   :  { %840 = vmatmul.bf16.vlgmr.msrb.gmra.mxu2 %v632_v39  ;;  %854 = vmatmul.bf16.vlgmr.msrb.gmra.mxu3 %v633_v37  ;;  %v2376_v4 = vld [vmem:[#allocation6 + $0x90] sm:$0xf]  ;;  %v2313_v7 = vor.u32 %v2746_v2, %v2312_v0 }
 0x27f   :  { %868 = vmatmul.bf16.vlgmr.msra.gmra.mxu0 %v632_v39  ;;  %882 = vmatmul.bf16.vlgmr.msra.gmra.mxu1 %v633_v37  ;;  %v2346_v39 = vld [vmem:[#allocation6 + $0x58] sm:$0xf0]  ;;  %v2409_v37 = vor.u32 %v2770_v10, %v2408_v5  ;;  %v2317_v10 = vor.u32 %v2745_v23, %v2314_v25 }
 0x280   :  { %1189 = vmatpush.bf16.msrb.mxu1 %v2421_v8  ;;  %v2349_v34 = vor.u32 %v2753_v11, %v2346_v39  ;;  %1148 = vmatpush.bf16.msra.mxu2 %v2345_v9  ;;  %v2762_v8 = vld [vmem:[#allocation6 + $0x94] sm:$0xf0]  ;;  %v2761_v11 = vld [vmem:[#allocation6 + $0x94] sm:$0xf]  ;;  %v2378_v39 = vld [vmem:[#allocation6 + $0x98] sm:$0xf0] }
 0x281   :  { %1162 = vmatpush.bf16.msra.mxu3 %v2409_v37  ;;  %v2377_v9 = vor.u32 %v2762_v8, %v2376_v4  ;;  %v2304_v37 = vld [vmem:[#allocation6] sm:$0xf] }
 0x282   :  { %1176 = vmatpush.bf16.msrb.mxu0 %v2349_v34 }
 0x2fc   :  { %v869_v48 = vpop.f32.mrf.mxu0  ;;  %v883_v17 = vpop.f32.mrf.mxu1 }
 0x2fd   :  { %v870_v15 = vadd.f32 %v869_v48, %v669_v40  ;;  %v2410_v48 = vld [vmem:[#allocation6 + $0xd8] sm:$0xf0] }
 0x2ff   :  { %v3280_v19 = vadd.f32 %v883_v17, %v870_v15  ;;  %v2752_v17 = vld [vmem:[#allocation6 + $0x44] sm:$0xf0] }
 0x301   :  { %v841_v18 = vpop.f32.mrf.mxu2  ;;  %v855_v1 = vpop.f32.mrf.mxu3  ;;  %v897_v28 = vmul.f32 %v3280_v19, %v3280_v19 }
 0x302   :  { %v842_v20 = vadd.f32 %v841_v18, %v668_v16  ;;  %v2400_v18 = vld [vmem:[#allocation6 + $0xc0] sm:$0xf] }
 0x304   :  { %v3282_v21 = vadd.f32 %v855_v1, %v842_v20  ;;  %v871_v22 = vpop.f32.mrf.mxu0  ;;  %v885_v30 = vpop.f32.mrf.mxu1  ;;  %v2768_v20 = vld [vmem:[#allocation6 + $0xc4] sm:$0xf0] }
 0x305   :  { %v872_v24 = vadd.f32 %v871_v22, %v669_v40  ;;  %v2769_v40 = vld [vmem:[#allocation6 + $0xd4] sm:$0xf]  ;;  %v2751_v22 = vld [vmem:[#allocation6 + $0x44] sm:$0xf] }
 0x306   :  { %v888_v26 = vadd.f32 %v3280_v19, %v3282_v21  ;;  %v896_v27 = vmul.f32 %v3282_v21, %v3282_v21  ;;  %v2413_v15 = vor.u32 %v2769_v40, %v2410_v48  ;;  %v2744_v48 = vld [vmem:[#allocation6 + $0x4] sm:$0xf0] }
 0x307   :  { %v3290_v32 = vadd.f32 %v885_v30, %v872_v24  ;;  %v2338_v24 = vld [vmem:[#allocation6 + $0x48] sm:$0xf0] }
 0x308   :  { %889 = vadd.xlane.f32.xlu2 %v888_v26  ;;  %v900_v29 = vadd.f32 %v897_v28, %v896_v27  ;;  %1190 = vmatpush.bf16.msrb.mxu1 %v2413_v15  ;;  %v2401_v26 = vor.u32 %v2768_v20, %v2400_v18  ;;  %v2341_v27 = vor.u32 %v2751_v22, %v2338_v24  ;;  %v2767_v28 = vld [vmem:[#allocation6 + $0xc4] sm:$0xf]  ;;  %v2368_v15 = vld [vmem:[#allocation6 + $0x80] sm:$0xf]  ;;  %v2306_v22 = vld [vmem:[#allocation6 + $0x8] sm:$0xf0] }
 0x309   :  { %v843_v31 = vpop.f32.mrf.mxu2  ;;  %v857_v35 = vpop.f32.mrf.mxu3  ;;  %v899_v42 = vmul.f32 %v3290_v32, %v3290_v32  ;;  %v2305_v18 = vor.u32 %v2744_v48, %v2304_v37  ;;  %v2743_v20 = vld [vmem:[#allocation6 + $0x4] sm:$0xf] }
 0x30a   :  { %v844_v33 = vadd.f32 %v843_v31, %v668_v16  ;;  %901 = vadd.xlane.f32.xlu1 %v900_v29  ;;  %v2336_v16 = vld [vmem:[#allocation6 + $0x40] sm:$0xf]  ;;  %v2402_v29 = vld [vmem:[#allocation6 + $0xc8] sm:$0xf0]  ;;  %1163 = vmatpush.bf16.msra.mxu3 %v2401_v26  ;;  %v2328_v31 = vld [vmem:[#allocation6 + $0x30] sm:$0xf] }
 0x30b   :  { %v2337_v1 = vor.u32 %v2752_v17, %v2336_v16  ;;  %v2405_v30 = vor.u32 %v2767_v28, %v2402_v29  ;;  %1177 = vmatpush.bf16.msrb.mxu0 %v2341_v27  ;;  %v2760_v16 = vld [vmem:[#allocation6 + $0x84] sm:$0xf0]  ;;  %v2381_v17 = vor.u32 %v2761_v11, %v2378_v39  ;;  %v2759_v24 = vld [vmem:[#allocation6 + $0x84] sm:$0xf]  ;;  %v2309_v27 = vor.u32 %v2743_v20, %v2306_v22  ;;  %v2370_v28 = vld [vmem:[#allocation6 + $0x88] sm:$0xf0] }
 0x30c   :  { %v3292_v36 = vadd.f32 %v857_v35, %v844_v33  ;;  %v2750_v33 = vld [vmem:[#allocation6 + $0x34] sm:$0xf0]  ;;  %v2392_v35 = vld [vmem:[#allocation6 + $0xb0] sm:$0xf]  ;;  %v2373_v29 = vor.u32 %v2759_v24, %v2370_v28 }
 0x30d   :  { %1149 = vmatpush.bf16.msra.mxu2 %v2337_v1  ;;  %1191 = vmatpush.bf16.msrb.mxu1 %v2405_v30  ;;  %v2369_v1 = vor.u32 %v2760_v16, %v2368_v15 }
 0x30e   :  { %v891_v38 = vadd.f32 %v3290_v32, %v3292_v36  ;;  %v898_v41 = vmul.f32 %v3292_v36, %v3292_v36 }
 0x310   :  { %892 = vadd.xlane.f32.xlu0 %v891_v38  ;;  %v903_v43 = vadd.f32 %v899_v42, %v898_v41  ;;  %v2329_v38 = vor.u32 %v2750_v33, %v2328_v31  ;;  %v2766_v41 = vld [vmem:[#allocation6 + $0xb4] sm:$0xf0]  ;;  %v2749_v42 = vld [vmem:[#allocation6 + $0x34] sm:$0xf] }
 0x311   :  { %v2393_v44 = vor.u32 %v2766_v41, %v2392_v35  ;;  %1192 = vmatpush.bf16.msrb.mxu1 %v2397_v50 }
 0x312   :  { %904 = vadd.xlane.f32.xlu2 %v903_v43  ;;  %v2330_v43 = vld [vmem:[#allocation6 + $0x38] sm:$0xf0]  ;;  %1150 = vmatpush.bf16.msra.mxu2 %v2329_v38 }
 0x313   :  { %v2333_v45 = vor.u32 %v2749_v42, %v2330_v43  ;;  %1164 = vmatpush.bf16.msra.mxu3 %v2393_v44 }
 0x315   :  { %1178 = vmatpush.bf16.msrb.mxu0 %v2333_v45  ;;  %1193 = vmatpush.bf16.msrb.mxu1 %v2389_v62 }
 0x316   :  { %1151 = vmatpush.bf16.msra.mxu2 %v2321_v54 }
 0x317   :  { %1165 = vmatpush.bf16.msra.mxu3 %v2385_v58 }
 0x319   :  { %1179 = vmatpush.bf16.msrb.mxu0 %v2325_v59  ;;  %1194 = vmatpush.bf16.msrb.mxu1 %v2381_v17 }
 0x31a   :  { %1152 = vmatpush.bf16.msra.mxu2 %v2313_v7 }
 0x31b   :  { %1166 = vmatpush.bf16.msra.mxu3 %v2377_v9 }
 0x31d   :  { %1180 = vmatpush.bf16.msrb.mxu0 %v2317_v10  ;;  %1195 = vmatpush.bf16.msrb.mxu1 %v2373_v29 }
 0x31e   :  { %1153 = vmatpush.bf16.msra.mxu2 %v2305_v18 }
 0x31f   :  { %1167 = vmatpush.bf16.msra.mxu3 %v2369_v1 }
 0x321   :  { %1181 = vmatpush.bf16.msrb.mxu0 %v2309_v27 }
 0x37b   :  { %v890_v63 = vpop.xlane.xlu2 %889 }
 0x37c   :  { %v3301_v6 = vmul.f32 %v890_v63, %v3218_v3 }
 0x37d   :  { %v902_v5 = vpop.xlane.xlu1 %901 }
 0x37e   :  { %v906_v34 = vmul.f32 %v902_v5, %v3218_v3  ;;  %v912_v40 = vmul.f32 %v3301_v6, %v3301_v6  ;;  %v908_v58 = vsub.f32 %v3282_v21, %v3301_v6  ;;  %v909_v59 = vsub.f32 %v3280_v19, %v3301_v6 }
 0x380   :  { %v914_v26 = vsub.f32 %v906_v34, %v912_v40 }
 0x382   :  { %v916_v30 = vadd.f32 1e-05, %v914_v26 }
 0x383   :  { %v893_v31 = vpop.xlane.xlu0 %892 }
 0x384   :  { %2860 = vrsqrt.f32 %v916_v30  ;;  %v895_v33 = vmul.f32 %v893_v31, %v3218_v3  ;;  %vm924_vm8 = vweird.f32 %v916_v30  ;;  %v2790_v31 = vld [vmem:[#allocation7 + $0x74] sm:$0xf0] }
 0x385   :  { %v905_v35 = vpop.xlane.xlu2 %904 }
 0x386   :  { %v913_v38 = vmul.f32 %v895_v33, %v895_v33  ;;  %v907_v41 = vmul.f32 %v905_v35, %v3218_v3  ;;  %v910_v61 = vsub.f32 %v3292_v36, %v895_v33  ;;  %v911_v62 = vsub.f32 %v3290_v32, %v895_v33  ;;  %v2552_v33 = vld [vmem:[#allocation7 + $0xf0] sm:$0xf] }
 0x388   :  { %v915_v42 = vsub.f32 %v907_v41, %v913_v38  ;;  %v2806_v38 = vld [vmem:[#allocation7 + $0xf4] sm:$0xf0]  ;;  %v2789_v41 = vld [vmem:[#allocation7 + $0x74] sm:$0xf] }
 0x38a   :  { %v2861_v43 = vpop.eup %2860  ;;  %v917_v44 = vadd.f32 1e-05, %v915_v42  ;;  %v2490_v42 = vld [vmem:[#allocation7 + $0x78] sm:$0xf0] }
 0x38b   :  { %v919_v45 = vmul.f32 %v2861_v43, %v916_v30  ;;  %vm925_vm7 = vweird.f32 %v2861_v43  ;;  %v2488_v30 = vld [vmem:[#allocation7 + $0x70] sm:$0xf] }
 0x38c   :  { %2862 = vrsqrt.f32 %v917_v44  ;;  %vm926_vm9 = vmor %vm924_vm8, %vm925_vm7  ;;  %vm934_vm11 = vweird.f32 %v917_v44  ;;  %v2489_v35 = vor.u32 %v2790_v31, %v2488_v30 }
 0x38d   :  { %v920_v46 = vmul.f32 %v2861_v43, %v919_v45  ;;  %v2805_v45 = vld [vmem:[#allocation7 + $0xf4] sm:$0xf] }
 0x38e   :  { %1468 = vmatpush.bf16.msrb.mxu2 %v2489_v35  ;;  %v2522_v35 = vld [vmem:[#allocation7 + $0xb8] sm:$0xf0] }
 0x38f   :  { %v921_v49 = vmul.f32 0.5, %v920_v46  ;;  %v2554_v46 = vld [vmem:[#allocation7 + $0xf8] sm:$0xf0] }
 0x391   :  { %v922_v50 = vsub.f32 1.5, %v921_v49  ;;  %v2557_v49 = vor.u32 %v2805_v45, %v2554_v46  ;;  %v2796_v45 = vld [vmem:[#allocation7 + $0xa4] sm:$0xf0]  ;;  %v2779_v46 = vld [vmem:[#allocation7 + $0x24] sm:$0xf] }
 0x392   :  { %v2863_v51 = vpop.eup %2862 }
 0x393   :  { %v929_v52 = vmul.f32 %v2863_v51, %v917_v44  ;;  %v923_v53 = vmul.f32 %v2861_v43, %v922_v50  ;;  %vm935_vm10 = vweird.f32 %v2863_v51  ;;  %v2493_v44 = vor.u32 %v2789_v41, %v2490_v42  ;;  %v2480_v50 = vld [vmem:[#allocation7 + $0x60] sm:$0xf]  ;;  %1510 = vmatpush.bf16.msra.mxu1 %v2557_v49  ;;  %v2780_v42 = vld [vmem:[#allocation7 + $0x24] sm:$0xf0]  ;;  %v2450_v49 = vld [vmem:[#allocation7 + $0x28] sm:$0xf0] }
 0x394   :  { %vm936_vm12 = vmor %vm934_vm11, %vm935_vm10  ;;  %v2448_v41 = vld [vmem:[#allocation7 + $0x20] sm:$0xf] }
 0x395   :  { %v930_v54 = vmul.f32 %v2863_v51, %v929_v52  ;;  %v927_v56 = vsel %vm926_vm9, %v2861_v43, %v923_v53  ;;  %v2553_v43 = vor.u32 %v2806_v38, %v2552_v33  ;;  %1496 = vmatpush.bf16.msra.mxu0 %v2493_v44  ;;  %v2544_v52 = vld [vmem:[#allocation7 + $0xe0] sm:$0xf]  ;;  %v2797_v33 = vld [vmem:[#allocation7 + $0xb4] sm:$0xf]  ;;  %v2449_v44 = vor.u32 %v2780_v42, %v2448_v41 }
 0x396   :  { %v938_v63 = vmul.f32 %v927_v56, %v908_v58  ;;  %v939_v0 = vmul.f32 %v927_v56, %v909_v59  ;;  %v2482_v56 = vld [vmem:[#allocation7 + $0x68] sm:$0xf0]  ;;  %v2803_v59 = vld [vmem:[#allocation7 + $0xe4] sm:$0xf]  ;;  %v2525_v38 = vor.u32 %v2797_v33, %v2522_v35 }
 0x397   :  { %v931_v55 = vmul.f32 0.5, %v930_v54  ;;  %1482 = vmatpush.bf16.msrb.mxu3 %v2553_v43  ;;  %v2804_v54 = vld [vmem:[#allocation7 + $0xe4] sm:$0xf0]  ;;  %v2512_v43 = vld [vmem:[#allocation7 + $0xa0] sm:$0xf] }
 0x398   :  { %v3315_v8 = vadd.f32 %v938_v63, %v3228_v12  ;;  %v3321_v19 = vadd.f32 %v939_v0, %v3232_v14  ;;  %v980_v12 = vld [vmem:[%s3490_s8] sm:$0x3]  ;;  %v2786_v63 = vld [vmem:[#allocation7 + $0x54] sm:$0xf0]  ;;  %v2536_v0 = vld [vmem:[#allocation7 + $0xd0] sm:$0xf] }
 0x399   :  { %v932_v57 = vsub.f32 1.5, %v931_v55  ;;  %v982_v25 = vperm.slane %v980_v12, 0  ;;  %v2787_v55 = vld [vmem:[#allocation7 + $0x64] sm:$0xf] }
 0x39a   :  { %v2485_v58 = vor.u32 %v2787_v55, %v2482_v56 }
 0x39b   :  { %v933_v60 = vmul.f32 %v2863_v51, %v932_v57  ;;  %v2545_v57 = vor.u32 %v2804_v54, %v2544_v52  ;;  %v2795_v52 = vld [vmem:[#allocation7 + $0xa4] sm:$0xf] }
 0x39c   :  { %1497 = vmatpush.bf16.msra.mxu0 %v2485_v58  ;;  %v2778_v58 = vld [vmem:[#allocation7 + $0x14] sm:$0xf0] }
 0x39d   :  { %v937_v2 = vsel %vm936_vm12, %v2863_v51, %v933_v60  ;;  %v2788_v51 = vld [vmem:[#allocation7 + $0x64] sm:$0xf0]  ;;  %v2546_v60 = vld [vmem:[#allocation7 + $0xe8] sm:$0xf0]  ;;  %1483 = vmatpush.bf16.msrb.mxu3 %v2545_v57  ;;  %v2440_v57 = vld [vmem:[#allocation7 + $0x10] sm:$0xf] }
 0x39e   :  { %v940_v4 = vmul.f32 %v937_v2, %v910_v61  ;;  %v941_v7 = vmul.f32 %v937_v2, %v911_v62  ;;  %v2481_v53 = vor.u32 %v2788_v51, %v2480_v50  ;;  %v2549_v61 = vor.u32 %v2803_v59, %v2546_v60  ;;  %v2472_v62 = vld [vmem:[#allocation7 + $0x50] sm:$0xf] }
 0x39f   :  { %v2473_v2 = vor.u32 %v2786_v63, %v2472_v62  ;;  %v2513_v50 = vor.u32 %v2796_v45, %v2512_v43  ;;  %v2453_v51 = vor.u32 %v2779_v46, %v2450_v49  ;;  %v2504_v59 = vld [vmem:[#allocation7 + $0x90] sm:$0xf]  ;;  %v2794_v62 = vld [vmem:[#allocation7 + $0x94] sm:$0xf0]  ;;  %v2777_v63 = vld [vmem:[#allocation7 + $0x14] sm:$0xf] }
 0x3a0   :  { %v3318_v21 = vadd.f32 %v940_v4, %v3230_v13  ;;  %v3324_v6 = vadd.f32 %v941_v7, %v3234_v47  ;;  %v983_v13 = vperm.slane %v980_v12, 1  ;;  %1469 = vmatpush.bf16.msrb.mxu2 %v2481_v53  ;;  %1511 = vmatpush.bf16.msra.mxu1 %v2549_v61  ;;  %v2802_v4 = vld [vmem:[#allocation7 + $0xd4] sm:$0xf0]  ;;  %v2785_v7 = vld [vmem:[#allocation7 + $0x54] sm:$0xf]  ;;  %v2441_v61 = vor.u32 %v2778_v58, %v2440_v57 }
 0x3a1   :  { %v2514_v53 = vld [vmem:[#allocation7 + $0xa8] sm:$0xf0] }
 0x3a2   :  { %v946_v32 = vpack.c.bf16 %v3318_v21, %v3315_v8  ;;  %v947_v36 = vpack.c.bf16 %v3324_v6, %v3321_v19  ;;  %v2517_v55 = vor.u32 %v2795_v52, %v2514_v53 }
 0x3a4   :  { %1154 = vmatmul.bf16.vlgmr.msra.gmra.mxu2 %v946_v32  ;;  %1168 = vmatmul.bf16.vlgmr.msra.gmra.mxu3 %v947_v36 }
 0x3a5   :  { %1182 = vmatmul.bf16.vlgmr.msrb.gmra.mxu0 %v946_v32  ;;  %1196 = vmatmul.bf16.vlgmr.msrb.gmra.mxu1 %v947_v36  ;;  %v2474_v32 = vld [vmem:[#allocation7 + $0x58] sm:$0xf0]  ;;  %v2537_v36 = vor.u32 %v2802_v4, %v2536_v0 }
 0x3a6   :  { %v2477_v12 = vor.u32 %v2785_v7, %v2474_v32  ;;  %1470 = vmatpush.bf16.msrb.mxu2 %v2473_v2  ;;  %v2442_v0 = vld [vmem:[#allocation7 + $0x18] sm:$0xf0]  ;;  %v2793_v7 = vld [vmem:[#allocation7 + $0x94] sm:$0xf] }
 0x3a7   :  { %1484 = vmatpush.bf16.msrb.mxu3 %v2537_v36  ;;  %v2506_v32 = vld [vmem:[#allocation7 + $0x98] sm:$0xf0]  ;;  %v2432_v36 = vld [vmem:[#allocation7] sm:$0xf] }
 0x3a8   :  { %1498 = vmatpush.bf16.msra.mxu0 %v2477_v12  ;;  %v2505_v12 = vor.u32 %v2794_v62, %v2504_v59 }
 0x422   :  { %v1183_v14 = vpop.f32.mrf.mxu0  ;;  %v1197_v47 = vpop.f32.mrf.mxu1 }
 0x423   :  { %v1184_v23 = vadd.f32 %v1183_v14, %v983_v13  ;;  %v2538_v14 = vld [vmem:[#allocation7 + $0xd8] sm:$0xf0] }
 0x425   :  { %v3333_v10 = vadd.f32 %v1197_v47, %v1184_v23  ;;  %v2784_v47 = vld [vmem:[#allocation7 + $0x44] sm:$0xf0] }
 0x427   :  { %v1155_v5 = vpop.f32.mrf.mxu2  ;;  %v1169_v9 = vpop.f32.mrf.mxu3  ;;  %v1211_v15 = vmul.f32 %v3333_v10, %v3333_v10 }
 0x428   :  { %v1156_v11 = vadd.f32 %v1155_v5, %v982_v25  ;;  %v2528_v5 = vld [vmem:[#allocation7 + $0xc0] sm:$0xf] }
 0x42a   :  { %v3335_v39 = vadd.f32 %v1169_v9, %v1156_v11  ;;  %v1185_v37 = vpop.f32.mrf.mxu0  ;;  %v1199_v17 = vpop.f32.mrf.mxu1  ;;  %v2800_v11 = vld [vmem:[#allocation7 + $0xc4] sm:$0xf0] }
 0x42b   :  { %v1186_v34 = vadd.f32 %v1185_v37, %v983_v13  ;;  %v2801_v13 = vld [vmem:[#allocation7 + $0xd4] sm:$0xf]  ;;  %v2783_v37 = vld [vmem:[#allocation7 + $0x44] sm:$0xf] }
 0x42c   :  { %v1202_v40 = vadd.f32 %v3333_v10, %v3335_v39  ;;  %v1210_v48 = vmul.f32 %v3335_v39, %v3335_v39  ;;  %v2541_v23 = vor.u32 %v2801_v13, %v2538_v14  ;;  %v2445_v13 = vor.u32 %v2777_v63, %v2442_v0 }
 0x42d   :  { %v3343_v1 = vadd.f32 %v1199_v17, %v1186_v34  ;;  %v2466_v34 = vld [vmem:[#allocation7 + $0x48] sm:$0xf0]  ;;  %v2509_v14 = vor.u32 %v2793_v7, %v2506_v32 }
 0x42e   :  { %1203 = vadd.xlane.f32.xlu0 %v1202_v40  ;;  %v1214_v16 = vadd.f32 %v1211_v15, %v1210_v48  ;;  %1512 = vmatpush.bf16.msra.mxu1 %v2541_v23  ;;  %v2529_v40 = vor.u32 %v2800_v11, %v2528_v5  ;;  %v2469_v48 = vor.u32 %v2783_v37, %v2466_v34  ;;  %v2799_v15 = vld [vmem:[#allocation7 + $0xc4] sm:$0xf]  ;;  %v2776_v23 = vld [vmem:[#allocation7 + $0x4] sm:$0xf0]  ;;  %v2434_v37 = vld [vmem:[#allocation7 + $0x8] sm:$0xf0] }
 0x42f   :  { %v1157_v18 = vpop.f32.mrf.mxu2  ;;  %v1171_v22 = vpop.f32.mrf.mxu3  ;;  %v1213_v28 = vmul.f32 %v3343_v1, %v3343_v1  ;;  %v2775_v11 = vld [vmem:[#allocation7 + $0x4] sm:$0xf] }
 0x430   :  { %v1158_v20 = vadd.f32 %v1157_v18, %v982_v25  ;;  %1215 = vadd.xlane.f32.xlu2 %v1214_v16  ;;  %v2464_v25 = vld [vmem:[#allocation7 + $0x40] sm:$0xf]  ;;  %v2530_v16 = vld [vmem:[#allocation7 + $0xc8] sm:$0xf0]  ;;  %1485 = vmatpush.bf16.msrb.mxu3 %v2529_v40  ;;  %v2456_v18 = vld [vmem:[#allocation7 + $0x30] sm:$0xf] }
 0x431   :  { %v2465_v9 = vor.u32 %v2784_v47, %v2464_v25  ;;  %v2533_v17 = vor.u32 %v2799_v15, %v2530_v16  ;;  %1499 = vmatpush.bf16.msra.mxu0 %v2469_v48  ;;  %v2496_v25 = vld [vmem:[#allocation7 + $0x80] sm:$0xf]  ;;  %v2792_v47 = vld [vmem:[#allocation7 + $0x84] sm:$0xf0]  ;;  %v2791_v34 = vld [vmem:[#allocation7 + $0x84] sm:$0xf]  ;;  %v2437_v48 = vor.u32 %v2775_v11, %v2434_v37 }
 0x432   :  { %v3345_v24 = vadd.f32 %v1171_v22, %v1158_v20  ;;  %v2782_v20 = vld [vmem:[#allocation7 + $0x34] sm:$0xf0]  ;;  %v2520_v22 = vld [vmem:[#allocation7 + $0xb0] sm:$0xf]  ;;  %v2497_v40 = vor.u32 %v2792_v47, %v2496_v25  ;;  %v2498_v15 = vld [vmem:[#allocation7 + $0x88] sm:$0xf0] }
 0x433   :  { %1471 = vmatpush.bf16.msrb.mxu2 %v2465_v9  ;;  %1513 = vmatpush.bf16.msra.mxu1 %v2533_v17  ;;  %v2433_v9 = vor.u32 %v2776_v23, %v2432_v36  ;;  %v2501_v17 = vor.u32 %v2791_v34, %v2498_v15 }
 0x434   :  { %v1205_v26 = vadd.f32 %v3343_v1, %v3345_v24  ;;  %v1212_v27 = vmul.f32 %v3345_v24, %v3345_v24 }
 0x436   :  { %1206 = vadd.xlane.f32.xlu1 %v1205_v26  ;;  %v1217_v29 = vadd.f32 %v1213_v28, %v1212_v27  ;;  %v2457_v26 = vor.u32 %v2782_v20, %v2456_v18  ;;  %v2798_v27 = vld [vmem:[#allocation7 + $0xb4] sm:$0xf0]  ;;  %v2781_v28 = vld [vmem:[#allocation7 + $0x34] sm:$0xf] }
 0x437   :  { %v2521_v30 = vor.u32 %v2798_v27, %v2520_v22  ;;  %1514 = vmatpush.bf16.msra.mxu1 %v2525_v38 }
 0x438   :  { %1218 = vadd.xlane.f32.xlu0 %v1217_v29  ;;  %v2458_v29 = vld [vmem:[#allocation7 + $0x38] sm:$0xf0]  ;;  %1472 = vmatpush.bf16.msrb.mxu2 %v2457_v26 }
 0x439   :  { %v2461_v31 = vor.u32 %v2781_v28, %v2458_v29  ;;  %1486 = vmatpush.bf16.msrb.mxu3 %v2521_v30 }
 0x43b   :  { %1500 = vmatpush.bf16.msra.mxu0 %v2461_v31  ;;  %1515 = vmatpush.bf16.msra.mxu1 %v2517_v55 }
 0x43c   :  { %1473 = vmatpush.bf16.msrb.mxu2 %v2449_v44 }
 0x43d   :  { %1487 = vmatpush.bf16.msrb.mxu3 %v2513_v50 }
 0x43f   :  { %1501 = vmatpush.bf16.msra.mxu0 %v2453_v51  ;;  %1516 = vmatpush.bf16.msra.mxu1 %v2509_v14 }
 0x440   :  { %1474 = vmatpush.bf16.msrb.mxu2 %v2441_v61 }
 0x441   :  { %1488 = vmatpush.bf16.msrb.mxu3 %v2505_v12 }
 0x443   :  { %1502 = vmatpush.bf16.msra.mxu0 %v2445_v13  ;;  %1517 = vmatpush.bf16.msra.mxu1 %v2501_v17 }
 0x444   :  { %1475 = vmatpush.bf16.msrb.mxu2 %v2433_v9 }
 0x445   :  { %1489 = vmatpush.bf16.msrb.mxu3 %v2497_v40 }
 0x447   :  { %1503 = vmatpush.bf16.msra.mxu0 %v2437_v48 }
 0x4a1   :  { %v1204_v54 = vpop.xlane.xlu0 %1203 }
 0x4a2   :  { %v3354_v56 = vmul.f32 %v1204_v54, %v3218_v3 }
 0x4a3   :  { %v1216_v60 = vpop.xlane.xlu2 %1215 }
 0x4a4   :  { %v1220_v2 = vmul.f32 %v1216_v60, %v3218_v3  ;;  %v1226_v4 = vmul.f32 %v3354_v56, %v3354_v56  ;;  %v1222_v49 = vsub.f32 %v3335_v39, %v3354_v56  ;;  %v1223_v50 = vsub.f32 %v3333_v10, %v3354_v56 }
 0x4a6   :  { %v1228_v5 = vsub.f32 %v1220_v2, %v1226_v4 }
 0x4a8   :  { %v1230_v16 = vadd.f32 1e-05, %v1228_v5 }
 0x4a9   :  { %v1207_v18 = vpop.xlane.xlu1 %1206 }
 0x4aa   :  { %2864 = vrsqrt.f32 %v1230_v16  ;;  %v1209_v20 = vmul.f32 %v1207_v18, %v3218_v3  ;;  %vm1238_vm14 = vweird.f32 %v1230_v16 }
 0x4ab   :  { %v1219_v22 = vpop.xlane.xlu0 %1218 }
 0x4ac   :  { %v1227_v26 = vmul.f32 %v1209_v20, %v1209_v20  ;;  %v1221_v27 = vmul.f32 %v1219_v22, %v3218_v3  ;;  %v1224_v55 = vsub.f32 %v3345_v24, %v1209_v20  ;;  %v1225_v57 = vsub.f32 %v3343_v1, %v1209_v20  ;;  %v1302_v1 = vld [vmem:[%s3492_s10] sm:$0x3] }
 0x4ad   :  { %v1305_v7 = vperm.slane %v1302_v1, 1  ;;  %v1304_v12 = vperm.slane %v1302_v1, 0 }
 0x4ae   :  { %v1229_v28 = vsub.f32 %v1221_v27, %v1227_v26 }
 0x4b0   :  { %v2865_v29 = vpop.eup %2864  ;;  %v1231_v30 = vadd.f32 1e-05, %v1229_v28 }
 0x4b1   :  { %v1233_v31 = vmul.f32 %v2865_v29, %v1230_v16  ;;  %vm1239_vm13 = vweird.f32 %v2865_v29 }
 0x4b2   :  { %2866 = vrsqrt.f32 %v1231_v30  ;;  %vm1240_vm15 = vmor %vm1238_vm14, %vm1239_vm13  ;;  %vm1248_vm1 = vweird.f32 %v1231_v30 }
 0x4b3   :  { %v1234_v33 = vmul.f32 %v2865_v29, %v1233_v31  ;;  %v2822_v31 = vld [vmem:[#allocation9 + $0x78] sm:$0xff] }
 0x4b4   :  { %1730 = vmatpush.bf16.msra.mxu3 %v2822_v31 }
 0x4b5   :  { %v1235_v35 = vmul.f32 0.5, %v1234_v33  ;;  %v2813_v33 = vld [vmem:[#allocation9 + $0x30] sm:$0xff] }
 0x4b7   :  { %v1236_v38 = vsub.f32 1.5, %v1235_v35  ;;  %v2821_v35 = vld [vmem:[#allocation9 + $0x70] sm:$0xff] }
 0x4b8   :  { %v2867_v41 = vpop.eup %2866  ;;  %1731 = vmatpush.bf16.msra.mxu3 %v2821_v35 }
 0x4b9   :  { %v1237_v42 = vmul.f32 %v2865_v29, %v1236_v38  ;;  %v1243_v43 = vmul.f32 %v2867_v41, %v1231_v30  ;;  %vm1249_vm0 = vweird.f32 %v2867_v41  ;;  %v2814_v30 = vld [vmem:[#allocation9 + $0x38] sm:$0xff]  ;;  %v2812_v38 = vld [vmem:[#allocation9 + $0x28] sm:$0xff] }
 0x4ba   :  { %vm1250_vm2 = vmor %vm1248_vm1, %vm1249_vm0  ;;  %1716 = vmatpush.bf16.msra.mxu2 %v2814_v30 }
 0x4bb   :  { %v1244_v44 = vmul.f32 %v2867_v41, %v1243_v43  ;;  %v1241_v45 = vsel %vm1240_vm15, %v2865_v29, %v1237_v42  ;;  %v2811_v42 = vld [vmem:[#allocation9 + $0x20] sm:$0xff] }
 0x4bc   :  { %v1252_v52 = vmul.f32 %v1241_v45, %v1222_v49  ;;  %v1253_v53 = vmul.f32 %v1241_v45, %v1223_v50  ;;  %v2819_v43 = vld [vmem:[#allocation9 + $0x60] sm:$0xff]  ;;  %v2818_v45 = vld [vmem:[#allocation9 + $0x58] sm:$0xff]  ;;  %v2817_v49 = vld [vmem:[#allocation9 + $0x50] sm:$0xff] }
 0x4bd   :  { %v1245_v46 = vmul.f32 0.5, %v1244_v44  ;;  %v2810_v44 = vld [vmem:[#allocation9 + $0x18] sm:$0xff] }
 0x4be   :  { %v1260_v61 = vmul.f32 0.2, %v1252_v52  ;;  %v1261_v62 = vmul.f32 0.2, %v1253_v53  ;;  %vm1256_vm3 = vcmp.ge.f32.partialorder %v1252_v52, 0.0  ;;  %vm1257_vm4 = vcmp.ge.f32.partialorder %v1253_v53, 0.0  ;;  %1717 = vmatpush.bf16.msra.mxu2 %v2813_v33 }
 0x4bf   :  { %v1246_v51 = vsub.f32 1.5, %v1245_v46  ;;  %v2809_v46 = vld [vmem:[#allocation9 + $0x10] sm:$0xff] }
 0x4c0   :  { %v1264_v56 = vsel %vm1256_vm3, %v1252_v52, %v1260_v61  ;;  %v1265_v0 = vsel %vm1257_vm4, %v1253_v53, %v1261_v62  ;;  %v2808_v52 = vld [vmem:[#allocation9 + $0x8] sm:$0xff] }
 0x4c1   :  { %v1247_v54 = vmul.f32 %v2867_v41, %v1246_v51  ;;  %v2816_v53 = vld [vmem:[#allocation9 + $0x48] sm:$0xff] }
 0x4c2   :  { %1718 = vmatpush.bf16.msra.mxu2 %v2812_v38 }
 0x4c3   :  { %v1251_v58 = vsel %vm1250_vm2, %v2867_v41, %v1247_v54  ;;  %v2820_v41 = vld [vmem:[#allocation9 + $0x68] sm:$0xff] }
 0x4c4   :  { %v1254_v59 = vmul.f32 %v1251_v58, %v1224_v55  ;;  %v1255_v60 = vmul.f32 %v1251_v58, %v1225_v57  ;;  %1732 = vmatpush.bf16.msra.mxu3 %v2820_v41  ;;  %v2807_v58 = vld [vmem:[#allocation9] sm:$0xff]  ;;  %v3024_v41 = vmov 128.0  }
 0x4c6   :  { %vm1258_vm5 = vcmp.ge.f32.partialorder %v1254_v59, 0.0  ;;  %v1262_v10 = vmul.f32 0.2, %v1254_v59  ;;  %vm1259_vm6 = vcmp.ge.f32.partialorder %v1255_v60, 0.0  ;;  %v1263_v39 = vmul.f32 0.2, %v1255_v60  ;;  %1719 = vmatpush.bf16.msra.mxu2 %v2811_v42 }
 0x4c7   :  { %v2830_v42 = vld [vmem:[%s3495_s13 + $0x38] sm:$0xff] }
 0x4c8   :  { %v1266_v63 = vsel %vm1258_vm5, %v1254_v59, %v1262_v10  ;;  %v1267_v2 = vsel %vm1259_vm6, %v1255_v60, %v1263_v39  ;;  %1733 = vmatpush.bf16.msra.mxu3 %v2819_v43  ;;  %v2815_v59 = vld [vmem:[#allocation9 + $0x40] sm:$0xff]  ;;  %1870 = vmatpush.bf16.msrb.mxu0 %v2830_v42  ;;  %vm1884_vm6 = vcmask 523264  }
 0x4c9   :  { %v1268_v4 = vpack.c.bf16 %v1266_v63, %v1264_v56  ;;  %v1269_v24 = vpack.c.bf16 %v1267_v2, %v1265_v0 }
 0x4ca   :  { %1720 = vmatpush.bf16.msra.mxu2 %v2810_v44 }
 0x4cb   :  { %1476 = vmatmul.bf16.vlgmr.msrb.gmra.mxu2 %v1268_v4  ;;  %1490 = vmatmul.bf16.vlgmr.msrb.gmra.mxu3 %v1269_v24 }
 0x4cc   :  { %1504 = vmatmul.bf16.vlgmr.msra.gmra.mxu0 %v1268_v4  ;;  %1518 = vmatmul.bf16.vlgmr.msra.gmra.mxu1 %v1269_v24 }
 0x4cd   :  { %1734 = vmatpush.bf16.msra.mxu3 %v2818_v45  ;;  %v2829_v45 = vld [vmem:[%s3495_s13 + $0x30] sm:$0xff] }
 0x4ce   :  { %1721 = vmatpush.bf16.msra.mxu2 %v2809_v46  ;;  %1871 = vmatpush.bf16.msrb.mxu0 %v2829_v45 }
 0x4d1   :  { %1735 = vmatpush.bf16.msra.mxu3 %v2817_v49  ;;  %v2828_v49 = vld [vmem:[%s3495_s13 + $0x28] sm:$0xff] }
 0x4d2   :  { %1722 = vmatpush.bf16.msra.mxu2 %v2808_v52  ;;  %1872 = vmatpush.bf16.msrb.mxu0 %v2828_v49 }
 0x4d5   :  { %1736 = vmatpush.bf16.msra.mxu3 %v2816_v53  ;;  %v2826_v53 = vld [vmem:[%s3495_s13 + $0x18] sm:$0xff] }
 0x4d6   :  { %1723 = vmatpush.bf16.msra.mxu2 %v2807_v58 }
 0x4d9   :  { %1737 = vmatpush.bf16.msra.mxu3 %v2815_v59 }
 0x549   :  { %v1505_v32 = vpop.f32.mrf.mxu0  ;;  %v1519_v13 = vpop.f32.mrf.mxu1 }
 0x54a   :  { %v1506_v36 = vadd.f32 %v1505_v32, %v1305_v7 }
 0x54c   :  { %v3370_v25 = vadd.f32 %v1519_v13, %v1506_v36 }
 0x54e   :  { %v1477_v14 = vpop.f32.mrf.mxu2  ;;  %v1491_v23 = vpop.f32.mrf.mxu3  ;;  %v1533_v40 = vmul.f32 %v3370_v25, %v3370_v25 }
 0x54f   :  { %v1478_v47 = vadd.f32 %v1477_v14, %v1304_v12 }
 0x551   :  { %v3372_v5 = vadd.f32 %v1491_v23, %v1478_v47  ;;  %v1507_v9 = vpop.f32.mrf.mxu0  ;;  %v1521_v15 = vpop.f32.mrf.mxu1 }
 0x552   :  { %v1508_v11 = vadd.f32 %v1507_v9, %v1305_v7 }
 0x553   :  { %v1524_v37 = vadd.f32 %v3370_v25, %v3372_v5  ;;  %v1532_v34 = vmul.f32 %v3372_v5, %v3372_v5 }
 0x554   :  { %v3380_v17 = vadd.f32 %v1521_v15, %v1508_v11 }
 0x555   :  { %1525 = vadd.xlane.f32.xlu1 %v1524_v37  ;;  %v1536_v48 = vadd.f32 %v1533_v40, %v1532_v34 }
 0x556   :  { %v1479_v16 = vpop.f32.mrf.mxu2  ;;  %v1493_v20 = vpop.f32.mrf.mxu3  ;;  %v1535_v28 = vmul.f32 %v3380_v17, %v3380_v17 }
 0x557   :  { %v1480_v18 = vadd.f32 %v1479_v16, %v1304_v12  ;;  %1537 = vadd.xlane.f32.xlu0 %v1536_v48 }
 0x559   :  { %v3382_v22 = vadd.f32 %v1493_v20, %v1480_v18 }
 0x55b   :  { %v1527_v26 = vadd.f32 %v3380_v17, %v3382_v22  ;;  %v1534_v27 = vmul.f32 %v3382_v22, %v3382_v22 }
 0x55d   :  { %1528 = vadd.xlane.f32.xlu2 %v1527_v26  ;;  %v1539_v29 = vadd.f32 %v1535_v28, %v1534_v27 }
 0x55f   :  { %1540 = vadd.xlane.f32.xlu1 %v1539_v29 }
 0x5c8   :  { %v1526_v50 = vpop.xlane.xlu1 %1525 }
 0x5c9   :  { %v1530_v51 = vmul.f32 %v1526_v50, %v3218_v3 }
 0x5ca   :  { %v1538_v54 = vpop.xlane.xlu0 %1537 }
 0x5cb   :  { %v1542_v55 = vmul.f32 %v1538_v54, %v3218_v3  ;;  %v1548_v57 = vmul.f32 %v1530_v51, %v1530_v51  ;;  %v1545_v11 = vsub.f32 %v3370_v25, %v1530_v51 }
 0x5cd   :  { %v1550_v60 = vsub.f32 %v1542_v55, %v1548_v57  ;;  %v2825_v55 = vld [vmem:[%s3495_s13 + $0x10] sm:$0xff] }
 0x5cf   :  { %v1552_v61 = vadd.f32 1e-05, %v1550_v60  ;;  %v2824_v60 = vld [vmem:[%s3495_s13 + $0x8] sm:$0xff] }
 0x5d0   :  { %v1529_v62 = vpop.xlane.xlu2 %1528 }
 0x5d1   :  { %2868 = vrsqrt.f32 %v1552_v61  ;;  %v1531_v10 = vmul.f32 %v1529_v62, %v3218_v3  ;;  %vm1560_vm8 = vweird.f32 %v1552_v61 }
 0x5d2   :  { %v1541_v39 = vpop.xlane.xlu1 %1540 }
 0x5d3   :  { %v1549_v56 = vmul.f32 %v1531_v10, %v1531_v10  ;;  %v1543_v63 = vmul.f32 %v1541_v39, %v3218_v3  ;;  %v1544_v3 = vsub.f32 %v3372_v5, %v1530_v51  ;;  %v1546_v34 = vsub.f32 %v3382_v22, %v1531_v10  ;;  %v2827_v51 = vld [vmem:[%s3495_s13 + $0x20] sm:$0xff] }
 0x5d4   :  { %v1547_v40 = vsub.f32 %v3380_v17, %v1531_v10  ;;  %v2847_v17 = vld [vmem:[%s3494_s12] ss:$0 sm:$0xff]  ;;  %1873 = vmatpush.bf16.msrb.mxu0 %v2827_v51 }
 0x5d5   :  { %v1551_v0 = vsub.f32 %v1543_v63, %v1549_v56  ;;  %v2823_v10 = vld [vmem:[%s3495_s13] sm:$0xff] }
 0x5d7   :  { %v2869_v2 = vpop.eup %2868  ;;  %v1553_v4 = vadd.f32 1e-05, %v1551_v0 }
 0x5d8   :  { %v1555_v24 = vmul.f32 %v2869_v2, %v1552_v61  ;;  %vm1561_vm7 = vweird.f32 %v2869_v2  ;;  %1874 = vmatpush.bf16.msrb.mxu0 %v2826_v53 }
 0x5d9   :  { %2870 = vrsqrt.f32 %v1553_v4  ;;  %vm1562_vm9 = vmor %vm1560_vm8, %vm1561_vm7  ;;  %vm1570_vm11 = vweird.f32 %v1553_v4 }
 0x5da   :  { %v1556_v1 = vmul.f32 %v2869_v2, %v1555_v24  ;;  %2872 = vrcp.f32 %v3024_v41 }
 0x5dc   :  { %v1557_v7 = vmul.f32 0.5, %v1556_v1  ;;  %1875 = vmatpush.bf16.msrb.mxu0 %v2825_v55 }
 0x5de   :  { %v1558_v32 = vsub.f32 1.5, %v1557_v7 }
 0x5df   :  { %v2871_v36 = vpop.eup %2870 }
 0x5e0   :  { %v1565_v12 = vmul.f32 %v2871_v36, %v1553_v4  ;;  %v1559_v13 = vmul.f32 %v2869_v2, %v1558_v32  ;;  %vm1571_vm10 = vweird.f32 %v2871_v36  ;;  %v2873_v43 = vpop.eup %2872  ;;  %1876 = vmatpush.bf16.msrb.mxu0 %v2824_v60 }
 0x5e1   :  { %vm1572_vm12 = vmor %vm1570_vm11, %vm1571_vm10  ;;  %v1749_v44 = vmul.f32 128.0, %v2873_v43  ;;  %vm1753_vm13 = vweird.f32 %v2873_v43 }
 0x5e2   :  { %v1566_v14 = vmul.f32 %v2871_v36, %v1565_v12  ;;  %v1563_v47 = vsel %vm1562_vm9, %v2869_v2, %v1559_v13 }
 0x5e3   :  { %v1574_v48 = vmul.f32 %v1563_v47, %v1544_v3  ;;  %v1575_v15 = vmul.f32 %v1563_v47, %v1545_v11  ;;  %v1750_v46 = vsub.f32 1.0, %v1749_v44 }
 0x5e4   :  { %v1567_v23 = vmul.f32 0.5, %v1566_v14  ;;  %1877 = vmatpush.bf16.msrb.mxu0 %v2823_v10 }
 0x5e5   :  { %v1578_v26 = vadd.f32 %v1574_v48, %v3315_v8  ;;  %v1579_v5 = vadd.f32 %v1575_v15, %v3321_v19  ;;  %v1751_v50 = vmul.f32 %v2873_v43, %v1750_v46  ;;  %v2834_v46 = vld [vmem:[%s3497_s15 + $0x18] sm:$0xff] }
 0x5e6   :  { %v1568_v9 = vsub.f32 1.5, %v1567_v23  ;;  %1990 = vmatpush.bf16.msrb.mxu1 %v2834_v46 }
 0x5e7   :  { %v1752_v52 = vadd.f32 %v2873_v43, %v1751_v50  ;;  %v2833_v50 = vld [vmem:[%s3497_s15 + $0x10] sm:$0xff] }
 0x5e8   :  { %v1569_v37 = vmul.f32 %v2871_v36, %v1568_v9 }
 0x5e9   :  { %v1754_v54 = vsel %vm1753_vm13, %v2873_v43, %v1752_v52 }
 0x5ea   :  { %v1573_v16 = vsel %vm1572_vm12, %v2871_v36, %v1569_v37  ;;  %1991 = vmatpush.bf16.msrb.mxu1 %v2833_v50 }
 0x5eb   :  { %v1576_v18 = vmul.f32 %v1573_v16, %v1546_v34  ;;  %v1577_v20 = vmul.f32 %v1573_v16, %v1547_v40 }
 0x5ed   :  { %v1580_v27 = vadd.f32 %v1576_v18, %v3318_v21  ;;  %v1581_v25 = vadd.f32 %v1577_v20, %v3324_v6 }
 0x5ef   :  { %v1582_v28 = vpack.c.bf16 %v1580_v27, %v1578_v26  ;;  %v1583_v29 = vpack.c.bf16 %v1581_v25, %v1579_v5 }
 0x5f1   :  { %1724 = vmatmul.bf16.vlgmr.msra.gmra.mxu2 %v1582_v28  ;;  %1738 = vmatmul.bf16.vlgmr.msra.gmra.mxu3 %v1583_v29  ;;  %v2848_v29 = vld [vmem:[%s3496_s14] ss:$0 sm:$0xff] }
 0x674   :  { %v1725_v22 = vpop.f32.mrf.mxu2  ;;  %v1739_v30 = vpop.f32.mrf.mxu3 }
 0x675   :  { %v1726_v31 = vadd.f32 %v2847_v17, %v1725_v22 }
 0x677   :  { %v3405_v33 = vadd.f32 %v1739_v30, %v1726_v31 }
 0x679   :  { %1744 = vadd.xlane.f32.xlu2 %v3405_v33  ;;  %v1757_v8 = vmul.f32 %v3405_v33, %v3405_v33 }
 0x67b   :  { %1759 = vadd.xlane.f32.xlu1 %v1757_v8 }
 0x67c   :  { %v1727_v21 = vpop.f32.mrf.mxu2  ;;  %v1741_v6 = vpop.f32.mrf.mxu3 }
 0x67d   :  { %v1728_v19 = vadd.f32 %v2847_v17, %v1727_v21 }
 0x67f   :  { %v3410_v35 = vadd.f32 %v1741_v6, %v1728_v19 }
 0x681   :  { %1746 = vadd.xlane.f32.xlu0 %v3410_v35  ;;  %v1758_v38 = vmul.f32 %v3410_v35, %v3410_v35 }
 0x683   :  { %1761 = vadd.xlane.f32.xlu2 %v1758_v38  ;;  %v3025_v38 = vmov 64.0  }
 0x6ec   :  { %v1745_v57 = vpop.xlane.xlu2 %1744 }
 0x6ed   :  { %v1755_v58 = vmul.f32 %v1754_v54, %v1745_v57 }
 0x6ee   :  { %v1760_v59 = vpop.xlane.xlu1 %1759 }
 0x6ef   :  { %v1767_v61 = vmul.f32 %v1755_v58, %v1755_v58  ;;  %v1763_v62 = vmul.f32 %v1760_v59, %v1754_v54  ;;  %v1765_v34 = vsub.f32 %v3405_v33, %v1755_v58  ;;  %v2831_v59 = vld [vmem:[%s3497_s15] sm:$0xff] }
 0x6f1   :  { %v1769_v39 = vsub.f32 %v1763_v62, %v1767_v61 }
 0x6f3   :  { %v1771_v56 = vadd.f32 1e-05, %v1769_v39 }
 0x6f4   :  { %v1747_v63 = vpop.xlane.xlu0 %1746 }
 0x6f5   :  { %2874 = vrsqrt.f32 %v1771_v56  ;;  %v1756_v0 = vmul.f32 %v1754_v54, %v1747_v63  ;;  %vm1779_vm15 = vweird.f32 %v1771_v56 }
 0x6f6   :  { %v1762_v2 = vpop.xlane.xlu2 %1761 }
 0x6f7   :  { %v1768_v4 = vmul.f32 %v1756_v0, %v1756_v0  ;;  %v1764_v24 = vmul.f32 %v1762_v2, %v1754_v54  ;;  %v1766_v16 = vsub.f32 %v3410_v35, %v1756_v0  ;;  %v2832_v54 = vld [vmem:[%s3497_s15 + $0x8] sm:$0xff] }
 0x6f8   :  { %1992 = vmatpush.bf16.msrb.mxu1 %v2832_v54 }
 0x6f9   :  { %v1770_v1 = vsub.f32 %v1764_v24, %v1768_v4 }
 0x6fb   :  { %v2875_v7 = vpop.eup %2874  ;;  %v1772_v32 = vadd.f32 1e-05, %v1770_v1 }
 0x6fc   :  { %v1774_v36 = vmul.f32 %v2875_v7, %v1771_v56  ;;  %vm1780_vm14 = vweird.f32 %v2875_v7  ;;  %1993 = vmatpush.bf16.msrb.mxu1 %v2831_v59 }
 0x6fd   :  { %2876 = vrsqrt.f32 %v1772_v32  ;;  %vm1781_vm0 = vmor %vm1779_vm15, %vm1780_vm14  ;;  %vm1789_vm2 = vweird.f32 %v1772_v32 }
 0x6fe   :  { %v1775_v12 = vmul.f32 %v2875_v7, %v1774_v36  ;;  %2878 = vrcp.f32 %v3025_v38 }
 0x700   :  { %v1776_v13 = vmul.f32 0.5, %v1775_v12 }
 0x702   :  { %v1777_v14 = vsub.f32 1.5, %v1776_v13 }
 0x703   :  { %v2877_v23 = vpop.eup %2876 }
 0x704   :  { %v1778_v47 = vmul.f32 %v2875_v7, %v1777_v14  ;;  %v1784_v9 = vmul.f32 %v2877_v23, %v1772_v32  ;;  %vm1790_vm1 = vweird.f32 %v2877_v23  ;;  %v2879_v41 = vpop.eup %2878 }
 0x705   :  { %vm1791_vm3 = vmor %vm1789_vm2, %vm1790_vm1  ;;  %v1892_v42 = vmul.f32 64.0, %v2879_v41  ;;  %vm1896_vm7 = vweird.f32 %v2879_v41 }
 0x706   :  { %v1785_v3 = vmul.f32 %v2877_v23, %v1784_v9  ;;  %v1782_v11 = vsel %vm1781_vm0, %v2875_v7, %v1778_v47  ;;  %vm2002_vm0 = vcmask 23552  }
 0x707   :  { %v1793_v48 = vmul.f32 %v1782_v11, %v1765_v34  ;;  %v1893_v43 = vsub.f32 1.0, %v1892_v42 }
 0x708   :  { %v1786_v37 = vmul.f32 0.5, %v1785_v3 }
 0x709   :  { %v1797_v26 = vmul.f32 0.2, %v1793_v48  ;;  %vm1795_vm4 = vcmp.ge.f32.partialorder %v1793_v48, 0.0  ;;  %v1894_v44 = vmul.f32 %v2879_v41, %v1893_v43 }
 0x70a   :  { %v1787_v40 = vsub.f32 1.5, %v1786_v37 }
 0x70b   :  { %v1799_v5 = vsel %vm1795_vm4, %v1793_v48, %v1797_v26  ;;  %v1895_v45 = vadd.f32 %v2879_v41, %v1894_v44  ;;  %v2849_v26 = vld [vmem:[%s3498_s16] ss:$0 sm:$0xff] }
 0x70c   :  { %v1788_v15 = vmul.f32 %v2877_v23, %v1787_v40 }
 0x70d   :  { %v1897_v49 = vsel %vm1896_vm7, %v2879_v41, %v1895_v45 }
 0x70e   :  { %v1792_v18 = vsel %vm1791_vm3, %v2877_v23, %v1788_v15 }
 0x70f   :  { %v1794_v20 = vmul.f32 %v1792_v18, %v1766_v16 }
 0x711   :  { %vm1796_vm5 = vcmp.ge.f32.partialorder %v1794_v20, 0.0  ;;  %v1798_v27 = vmul.f32 0.2, %v1794_v20 }
 0x713   :  { %v1800_v25 = vsel %vm1796_vm5, %v1794_v20, %v1798_v27 }
 0x714   :  { %v1801_v28 = vpack.c.bf16 %v1800_v25, %v1799_v5 }
 0x716   :  { %1878 = vmatmul.bf16.vlgmr.msrb.gmra.mxu0 %v1801_v28 }
 0x793   :  { %v1879_v17 = vpop.f32.mrf.mxu0 }
 0x794   :  { %v3444_v22 = vadd.f32 %v2848_v29, %v1879_v17 }
 0x796   :  { %v1885_v30 = vsel %vm1884_vm6, %v3444_v22, 0.0  ;;  %v1900_v31 = vmul.f32 %v3444_v22, %v3444_v22 }
 0x797   :  { %1886 = vadd.xlane.f32.xlu0 %v1885_v30 }
 0x798   :  { %v1902_v33 = vsel %vm1884_vm6, %v1900_v31, 0.0 }
 0x799   :  { %1903 = vadd.xlane.f32.xlu2 %v1902_v33 }
 0x79b   :  { %v1881_v8 = vpop.f32.mrf.mxu0 }
 0x79c   :  { %v3451_v21 = vadd.f32 %v2848_v29, %v1881_v8 }
 0x79e   :  { %v1888_v19 = vsel %vm1884_vm6, %v3451_v21, 0.0  ;;  %v1901_v6 = vmul.f32 %v3451_v21, %v3451_v21 }
 0x79f   :  { %1889 = vadd.xlane.f32.xlu1 %v1888_v19 }
 0x7a0   :  { %v1905_v35 = vsel %vm1884_vm6, %v1901_v6, 0.0 }
 0x7a1   :  { %1906 = vadd.xlane.f32.xlu0 %v1905_v35 }
 0x80a   :  { %v1887_v51 = vpop.xlane.xlu0 %1886 }
 0x80b   :  { %v1898_v52 = vmul.f32 %v1897_v49, %v1887_v51 }
 0x80c   :  { %v1904_v53 = vpop.xlane.xlu2 %1903 }
 0x80d   :  { %v1912_v55 = vmul.f32 %v1898_v52, %v1898_v52  ;;  %v1908_v57 = vmul.f32 %v1904_v53, %v1897_v49  ;;  %v1910_v47 = vsub.f32 %v3444_v22, %v1898_v52 }
 0x80f   :  { %v1914_v58 = vsub.f32 %v1908_v57, %v1912_v55 }
 0x811   :  { %v1916_v60 = vadd.f32 1e-05, %v1914_v58 }
 0x812   :  { %v1890_v61 = vpop.xlane.xlu1 %1889 }
 0x813   :  { %2880 = vrsqrt.f32 %v1916_v60  ;;  %v1899_v62 = vmul.f32 %v1897_v49, %v1890_v61  ;;  %vm1924_vm9 = vweird.f32 %v1916_v60 }
 0x814   :  { %v1907_v10 = vpop.xlane.xlu0 %1906 }
 0x815   :  { %v1913_v39 = vmul.f32 %v1899_v62, %v1899_v62  ;;  %v1909_v56 = vmul.f32 %v1907_v10, %v1897_v49  ;;  %v1911_v37 = vsub.f32 %v3451_v21, %v1899_v62 }
 0x817   :  { %v1915_v63 = vsub.f32 %v1909_v56, %v1913_v39 }
 0x819   :  { %v2881_v0 = vpop.eup %2880  ;;  %v1917_v2 = vadd.f32 1e-05, %v1915_v63 }
 0x81a   :  { %v1919_v4 = vmul.f32 %v2881_v0, %v1916_v60  ;;  %vm1925_vm8 = vweird.f32 %v2881_v0 }
 0x81b   :  { %2882 = vrsqrt.f32 %v1917_v2  ;;  %vm1926_vm10 = vmor %vm1924_vm9, %vm1925_vm8  ;;  %vm1934_vm12 = vweird.f32 %v1917_v2 }
 0x81c   :  { %v1920_v24 = vmul.f32 %v2881_v0, %v1919_v4 }
 0x81e   :  { %v1921_v1 = vmul.f32 0.5, %v1920_v24 }
 0x820   :  { %v1922_v7 = vsub.f32 1.5, %v1921_v1 }
 0x821   :  { %v2883_v32 = vpop.eup %2882 }
 0x822   :  { %v1923_v36 = vmul.f32 %v2881_v0, %v1922_v7  ;;  %v1929_v12 = vmul.f32 %v2883_v32, %v1917_v2  ;;  %vm1935_vm11 = vweird.f32 %v2883_v32 }
 0x823   :  { %vm1936_vm13 = vmor %vm1934_vm12, %vm1935_vm11 }
 0x824   :  { %v1930_v13 = vmul.f32 %v2883_v32, %v1929_v12  ;;  %v1927_v14 = vsel %vm1926_vm10, %v2881_v0, %v1923_v36 }
 0x825   :  { %v1938_v3 = vmul.f32 %v1927_v14, %v1910_v47 }
 0x826   :  { %v1931_v23 = vmul.f32 0.5, %v1930_v13 }
 0x827   :  { %v1942_v40 = vmul.f32 0.2, %v1938_v3  ;;  %vm1940_vm14 = vcmp.ge.f32.partialorder %v1938_v3, 0.0 }
 0x828   :  { %v1932_v9 = vsub.f32 1.5, %v1931_v23 }
 0x829   :  { %v1944_v16 = vsel %vm1940_vm14, %v1938_v3, %v1942_v40 }
 0x82a   :  { %v1933_v11 = vmul.f32 %v2883_v32, %v1932_v9 }
 0x82c   :  { %v1937_v34 = vsel %vm1936_vm13, %v2883_v32, %v1933_v11 }
 0x82d   :  { %v1939_v48 = vmul.f32 %v1937_v34, %v1911_v37 }
 0x82f   :  { %v1943_v15 = vmul.f32 0.2, %v1939_v48  ;;  %vm1941_vm15 = vcmp.ge.f32.partialorder %v1939_v48, 0.0 }
 0x831   :  { %v1945_v18 = vsel %vm1941_vm15, %v1939_v48, %v1943_v15 }
 0x832   :  { %v1946_v20 = vpack.c.bf16 %v1945_v18, %v1944_v16 }
 0x834   :  { %2670 = vmatmul.msk.bf16.vlgmr.msrb.gmra.mxu1 %vm1884_vm6, %v1946_v20 }
 0x8b1   :  { %v1995_v27 = vpop.f32.mrf.mxu1 }
 0x8b2   :  { %v1996_v5 = vadd.f32 %v2849_v26, %v1995_v27 }
 0x8b4   :  { %2884 = vtanh.f32 %v1996_v5 }
 0x8b9   :  { %v1997_v25 = vpop.f32.mrf.mxu1 }
 0x8ba   :  { %v2885_v28 = vpop.eup %2884  ;;  %v1998_v29 = vadd.f32 %v2849_v26, %v1997_v25 }
 0x8bb   :  { %2003 = vst.msk [vmem:[%s3499_s17] sm:$0xff] %vm2002_vm0, %v2885_v28 }
 0x8bc   :  { %2886 = vtanh.f32 %v1998_v29 }
 0x8c2   :  { %v2887_v17 = vpop.eup %2886 }
 0x8c3   :  { %2004 = vst.msk [vmem:[%s3499_s17 + $0x8] sm:$0xff] %vm2002_vm0, %v2887_v17 }
 0x8c4   :  { %2009 = vsyncpa [#allocation3], 1 }
 0x8c5   :  { %2010 = vsyncpa [#allocation5], 1 }
 0x8c6   :  { %2011 = vsyncpa [#allocation8], 1 }

</bundles_post_ra>
